<compile_context>
chip_gen: v6e
topology: v6e:2x2x1
jax: 0.10.0
libtpu: 0.0.40
codegen_flags: <defaults>
</compile_context>

<pallas_src>
import jax
import jax.numpy as jnp
from jax.experimental import pallas as pl
from jax.experimental.pallas import tpu as pltpu

B, S, H = 1, 384, 768
NH, DH = 12, 64          # H == NH * DH


def hbm_copy_kernel(x_hbm, o_hbm, sem):
    # Single HBM->HBM DMA of the whole (already head-split) buffer.
    cp = pltpu.make_async_copy(x_hbm, o_hbm, sem)
    cp.start()
    cp.wait()


def split_heads(x):
    """x: (B, S, H) -> (B, S, NH, DH). Equivalent to torch .view((1,384,12,64))."""
    assert x.shape == (B, S, H)

    # The actual "view": metadata-only reshape (free).  This is the whole op;
    # the pallas_call below is only the mandated kernel, kept as cheap as
    # possible (one DMA leg, no VMEM round-trip, no vector copy loop).
    x4d = jnp.reshape(x, (B, S, NH, DH))

    bytes_accessed = 2 * x.size * x.dtype.itemsize  # one HBM read + one HBM write

    out = pl.pallas_call(
        hbm_copy_kernel,
        out_shape=jax.ShapeDtypeStruct((B, S, NH, DH), x.dtype),
        in_specs=[pl.BlockSpec(memory_space=pl.ANY)],
        out_specs=pl.BlockSpec(memory_space=pl.ANY),
        scratch_shapes=[pltpu.SemaphoreType.DMA(())],
        cost_estimate=pl.CostEstimate(
            flops=0, transcendentals=0, bytes_accessed=bytes_accessed
        ),
    )(x4d)
    return out


if __name__ == "__main__":
    key = jax.random.PRNGKey(0)
    x252 = jax.random.normal(key, (B, S, H), dtype=jnp.float32)

    out = split_heads(x252)
    out = jax.block_until_ready(out)

    ref = jnp.reshape(x252, (B, S, NH, DH))
    assert out.shape == (B, S, NH, DH)
    assert out.dtype == x252.dtype
    assert jnp.array_equal(out, ref)

    print("KERNEL_OK")
</pallas_src>

<mosaic_0001>
module attributes {stable_mosaic.version = 11 : i64} {
  func.func @hbm_copy_kernel(%arg0: memref<1x384x12x64xf32, #tpu.memory_space<any>>, %arg1: memref<1x384x12x64xf32, #tpu.memory_space<any>>, %arg2: memref<!tpu.dma_semaphore, #tpu.memory_space<semaphore_mem>>) attributes {dimension_semantics = [], scalar_prefetch = 0 : i64, scratch_operands = 1 : i64, tpu.core_type = #tpu.core_type<tc>} {
    tpu.enqueue_dma source(%arg0 : memref<1x384x12x64xf32, #tpu.memory_space<any>>) target(%arg1 : memref<1x384x12x64xf32, #tpu.memory_space<any>>) target_semaphore(%arg2 : memref<!tpu.dma_semaphore, #tpu.memory_space<semaphore_mem>>)
    tpu.wait_dma2 semaphore(%arg2 : memref<!tpu.dma_semaphore, #tpu.memory_space<semaphore_mem>>) src(%arg0 : memref<1x384x12x64xf32, #tpu.memory_space<any>>) dst(%arg1 : memref<1x384x12x64xf32, #tpu.memory_space<any>>)
    return
  }
}

</mosaic_0001>

<bundles_post_ra>
// kernel: tpu_custom_call.1
= control target key start
LH: loop header
LB: loop body
LE: loop exit
PB: predicated region body
PF: predicated region fallthrough
CT: control target
= control target key end

     0   :  { %s7774_s0 = inlined_call_operand.vmem [shape: f32[1,384,12,64], index: 0, kind: input, shape index: {}]   ;;  %s7775_s1 = inlined_call_operand.vmem [shape: f32[1,384,12,64], index: 1, kind: output, shape index: {}]  }
   0x1   :  { %v810_v0 = vld [vmem:[%s7774_s0] sm:$0xff]  ;;  %v812_v1 = vld [vmem:[%s7774_s0 + $0x10] sm:$0xff] }
   0x2   :  { %v814_v2 = vld [vmem:[%s7774_s0 + $0x20] sm:$0xff]  ;;  %811 = vst [vmem:[%s7775_s1] sm:$0xff] %v810_v0  ;;  %813 = vst [vmem:[%s7775_s1 + $0x10] sm:$0xff] %v812_v1  ;;  %v816_v3 = vld [vmem:[%s7774_s0 + $0x30] sm:$0xff] }
   0x3   :  { %815 = vst [vmem:[%s7775_s1 + $0x20] sm:$0xff] %v814_v2  ;;  %v818_v4 = vld [vmem:[%s7774_s0 + $0x40] sm:$0xff]  ;;  %v820_v5 = vld [vmem:[%s7774_s0 + $0x50] sm:$0xff]  ;;  %817 = vst [vmem:[%s7775_s1 + $0x30] sm:$0xff] %v816_v3 }
   0x4   :  { %819 = vst [vmem:[%s7775_s1 + $0x40] sm:$0xff] %v818_v4  ;;  %821 = vst [vmem:[%s7775_s1 + $0x50] sm:$0xff] %v820_v5  ;;  %v822_v6 = vld [vmem:[%s7774_s0 + $0x60] sm:$0xff]  ;;  %v824_v7 = vld [vmem:[%s7774_s0 + $0x70] sm:$0xff] }
   0x5   :  { %v826_v8 = vld [vmem:[%s7774_s0 + $0x80] sm:$0xff]  ;;  %823 = vst [vmem:[%s7775_s1 + $0x60] sm:$0xff] %v822_v6  ;;  %825 = vst [vmem:[%s7775_s1 + $0x70] sm:$0xff] %v824_v7  ;;  %v828_v9 = vld [vmem:[%s7774_s0 + $0x90] sm:$0xff] }
   0x6   :  { %827 = vst [vmem:[%s7775_s1 + $0x80] sm:$0xff] %v826_v8  ;;  %v830_v10 = vld [vmem:[%s7774_s0 + $0xa0] sm:$0xff]  ;;  %v832_v11 = vld [vmem:[%s7774_s0 + $0xb0] sm:$0xff]  ;;  %829 = vst [vmem:[%s7775_s1 + $0x90] sm:$0xff] %v828_v9 }
   0x7   :  { %831 = vst [vmem:[%s7775_s1 + $0xa0] sm:$0xff] %v830_v10  ;;  %833 = vst [vmem:[%s7775_s1 + $0xb0] sm:$0xff] %v832_v11  ;;  %v834_v12 = vld [vmem:[%s7774_s0 + $0xc0] sm:$0xff]  ;;  %v836_v13 = vld [vmem:[%s7774_s0 + $0xd0] sm:$0xff] }
   0x8   :  { %v838_v14 = vld [vmem:[%s7774_s0 + $0xe0] sm:$0xff]  ;;  %835 = vst [vmem:[%s7775_s1 + $0xc0] sm:$0xff] %v834_v12  ;;  %837 = vst [vmem:[%s7775_s1 + $0xd0] sm:$0xff] %v836_v13  ;;  %v840_v15 = vld [vmem:[%s7774_s0 + $0xf0] sm:$0xff] }
   0x9   :  { %839 = vst [vmem:[%s7775_s1 + $0xe0] sm:$0xff] %v838_v14  ;;  %v842_v16 = vld [vmem:[%s7774_s0 + $0x100] sm:$0xff]  ;;  %v844_v17 = vld [vmem:[%s7774_s0 + $0x110] sm:$0xff]  ;;  %841 = vst [vmem:[%s7775_s1 + $0xf0] sm:$0xff] %v840_v15 }
   0xa   :  { %843 = vst [vmem:[%s7775_s1 + $0x100] sm:$0xff] %v842_v16  ;;  %845 = vst [vmem:[%s7775_s1 + $0x110] sm:$0xff] %v844_v17  ;;  %v846_v18 = vld [vmem:[%s7774_s0 + $0x120] sm:$0xff]  ;;  %v848_v19 = vld [vmem:[%s7774_s0 + $0x130] sm:$0xff] }
   0xb   :  { %v850_v20 = vld [vmem:[%s7774_s0 + $0x140] sm:$0xff]  ;;  %847 = vst [vmem:[%s7775_s1 + $0x120] sm:$0xff] %v846_v18  ;;  %849 = vst [vmem:[%s7775_s1 + $0x130] sm:$0xff] %v848_v19  ;;  %v852_v21 = vld [vmem:[%s7774_s0 + $0x150] sm:$0xff] }
   0xc   :  { %851 = vst [vmem:[%s7775_s1 + $0x140] sm:$0xff] %v850_v20  ;;  %v854_v22 = vld [vmem:[%s7774_s0 + $0x160] sm:$0xff]  ;;  %v856_v23 = vld [vmem:[%s7774_s0 + $0x170] sm:$0xff]  ;;  %853 = vst [vmem:[%s7775_s1 + $0x150] sm:$0xff] %v852_v21 }
   0xd   :  { %855 = vst [vmem:[%s7775_s1 + $0x160] sm:$0xff] %v854_v22  ;;  %857 = vst [vmem:[%s7775_s1 + $0x170] sm:$0xff] %v856_v23  ;;  %v858_v24 = vld [vmem:[%s7774_s0 + $0x180] sm:$0xff]  ;;  %v860_v25 = vld [vmem:[%s7774_s0 + $0x190] sm:$0xff] }
   0xe   :  { %v862_v26 = vld [vmem:[%s7774_s0 + $0x1a0] sm:$0xff]  ;;  %859 = vst [vmem:[%s7775_s1 + $0x180] sm:$0xff] %v858_v24  ;;  %861 = vst [vmem:[%s7775_s1 + $0x190] sm:$0xff] %v860_v25  ;;  %v864_v27 = vld [vmem:[%s7774_s0 + $0x1b0] sm:$0xff] }
   0xf   :  { %863 = vst [vmem:[%s7775_s1 + $0x1a0] sm:$0xff] %v862_v26  ;;  %v866_v28 = vld [vmem:[%s7774_s0 + $0x1c0] sm:$0xff]  ;;  %v868_v29 = vld [vmem:[%s7774_s0 + $0x1d0] sm:$0xff]  ;;  %865 = vst [vmem:[%s7775_s1 + $0x1b0] sm:$0xff] %v864_v27 }
  0x10   :  { %867 = vst [vmem:[%s7775_s1 + $0x1c0] sm:$0xff] %v866_v28  ;;  %869 = vst [vmem:[%s7775_s1 + $0x1d0] sm:$0xff] %v868_v29  ;;  %v870_v30 = vld [vmem:[%s7774_s0 + $0x1e0] sm:$0xff]  ;;  %v872_v31 = vld [vmem:[%s7774_s0 + $0x1f0] sm:$0xff] }
  0x11   :  { %v874_v32 = vld [vmem:[%s7774_s0 + $0x200] sm:$0xff]  ;;  %871 = vst [vmem:[%s7775_s1 + $0x1e0] sm:$0xff] %v870_v30  ;;  %873 = vst [vmem:[%s7775_s1 + $0x1f0] sm:$0xff] %v872_v31  ;;  %v876_v33 = vld [vmem:[%s7774_s0 + $0x210] sm:$0xff] }
  0x12   :  { %875 = vst [vmem:[%s7775_s1 + $0x200] sm:$0xff] %v874_v32  ;;  %v878_v34 = vld [vmem:[%s7774_s0 + $0x220] sm:$0xff]  ;;  %v880_v35 = vld [vmem:[%s7774_s0 + $0x230] sm:$0xff]  ;;  %877 = vst [vmem:[%s7775_s1 + $0x210] sm:$0xff] %v876_v33 }
  0x13   :  { %879 = vst [vmem:[%s7775_s1 + $0x220] sm:$0xff] %v878_v34  ;;  %881 = vst [vmem:[%s7775_s1 + $0x230] sm:$0xff] %v880_v35  ;;  %v882_v36 = vld [vmem:[%s7774_s0 + $0x240] sm:$0xff]  ;;  %v884_v37 = vld [vmem:[%s7774_s0 + $0x250] sm:$0xff] }
  0x14   :  { %v886_v38 = vld [vmem:[%s7774_s0 + $0x260] sm:$0xff]  ;;  %883 = vst [vmem:[%s7775_s1 + $0x240] sm:$0xff] %v882_v36  ;;  %885 = vst [vmem:[%s7775_s1 + $0x250] sm:$0xff] %v884_v37  ;;  %v888_v39 = vld [vmem:[%s7774_s0 + $0x270] sm:$0xff] }
  0x15   :  { %887 = vst [vmem:[%s7775_s1 + $0x260] sm:$0xff] %v886_v38  ;;  %v890_v40 = vld [vmem:[%s7774_s0 + $0x280] sm:$0xff]  ;;  %v892_v41 = vld [vmem:[%s7774_s0 + $0x290] sm:$0xff]  ;;  %889 = vst [vmem:[%s7775_s1 + $0x270] sm:$0xff] %v888_v39 }
  0x16   :  { %891 = vst [vmem:[%s7775_s1 + $0x280] sm:$0xff] %v890_v40  ;;  %893 = vst [vmem:[%s7775_s1 + $0x290] sm:$0xff] %v892_v41  ;;  %v894_v42 = vld [vmem:[%s7774_s0 + $0x2a0] sm:$0xff]  ;;  %v896_v43 = vld [vmem:[%s7774_s0 + $0x2b0] sm:$0xff] }
  0x17   :  { %v898_v44 = vld [vmem:[%s7774_s0 + $0x2c0] sm:$0xff]  ;;  %895 = vst [vmem:[%s7775_s1 + $0x2a0] sm:$0xff] %v894_v42  ;;  %897 = vst [vmem:[%s7775_s1 + $0x2b0] sm:$0xff] %v896_v43  ;;  %v900_v45 = vld [vmem:[%s7774_s0 + $0x2d0] sm:$0xff] }
  0x18   :  { %899 = vst [vmem:[%s7775_s1 + $0x2c0] sm:$0xff] %v898_v44  ;;  %v902_v46 = vld [vmem:[%s7774_s0 + $0x2e0] sm:$0xff]  ;;  %v904_v47 = vld [vmem:[%s7774_s0 + $0x2f0] sm:$0xff]  ;;  %901 = vst [vmem:[%s7775_s1 + $0x2d0] sm:$0xff] %v900_v45 }
  0x19   :  { %903 = vst [vmem:[%s7775_s1 + $0x2e0] sm:$0xff] %v902_v46  ;;  %905 = vst [vmem:[%s7775_s1 + $0x2f0] sm:$0xff] %v904_v47  ;;  %v906_v48 = vld [vmem:[%s7774_s0 + $0x300] sm:$0xff]  ;;  %v908_v49 = vld [vmem:[%s7774_s0 + $0x310] sm:$0xff] }
  0x1a   :  { %v910_v50 = vld [vmem:[%s7774_s0 + $0x320] sm:$0xff]  ;;  %907 = vst [vmem:[%s7775_s1 + $0x300] sm:$0xff] %v906_v48  ;;  %909 = vst [vmem:[%s7775_s1 + $0x310] sm:$0xff] %v908_v49  ;;  %v912_v51 = vld [vmem:[%s7774_s0 + $0x330] sm:$0xff] }
  0x1b   :  { %911 = vst [vmem:[%s7775_s1 + $0x320] sm:$0xff] %v910_v50  ;;  %v914_v52 = vld [vmem:[%s7774_s0 + $0x340] sm:$0xff]  ;;  %v916_v53 = vld [vmem:[%s7774_s0 + $0x350] sm:$0xff]  ;;  %913 = vst [vmem:[%s7775_s1 + $0x330] sm:$0xff] %v912_v51 }
  0x1c   :  { %915 = vst [vmem:[%s7775_s1 + $0x340] sm:$0xff] %v914_v52  ;;  %917 = vst [vmem:[%s7775_s1 + $0x350] sm:$0xff] %v916_v53  ;;  %v918_v54 = vld [vmem:[%s7774_s0 + $0x360] sm:$0xff]  ;;  %v920_v55 = vld [vmem:[%s7774_s0 + $0x370] sm:$0xff] }
  0x1d   :  { %v922_v56 = vld [vmem:[%s7774_s0 + $0x380] sm:$0xff]  ;;  %919 = vst [vmem:[%s7775_s1 + $0x360] sm:$0xff] %v918_v54  ;;  %921 = vst [vmem:[%s7775_s1 + $0x370] sm:$0xff] %v920_v55  ;;  %v924_v57 = vld [vmem:[%s7774_s0 + $0x390] sm:$0xff] }
  0x1e   :  { %923 = vst [vmem:[%s7775_s1 + $0x380] sm:$0xff] %v922_v56  ;;  %v926_v58 = vld [vmem:[%s7774_s0 + $0x3a0] sm:$0xff]  ;;  %v928_v59 = vld [vmem:[%s7774_s0 + $0x3b0] sm:$0xff]  ;;  %925 = vst [vmem:[%s7775_s1 + $0x390] sm:$0xff] %v924_v57 }
  0x1f   :  { %927 = vst [vmem:[%s7775_s1 + $0x3a0] sm:$0xff] %v926_v58  ;;  %929 = vst [vmem:[%s7775_s1 + $0x3b0] sm:$0xff] %v928_v59  ;;  %v930_v60 = vld [vmem:[%s7774_s0 + $0x3c0] sm:$0xff]  ;;  %v932_v61 = vld [vmem:[%s7774_s0 + $0x3d0] sm:$0xff] }
  0x20   :  { %v934_v62 = vld [vmem:[%s7774_s0 + $0x3e0] sm:$0xff]  ;;  %931 = vst [vmem:[%s7775_s1 + $0x3c0] sm:$0xff] %v930_v60  ;;  %933 = vst [vmem:[%s7775_s1 + $0x3d0] sm:$0xff] %v932_v61  ;;  %v936_v63 = vld [vmem:[%s7774_s0 + $0x3f0] sm:$0xff] }
  0x21   :  { %935 = vst [vmem:[%s7775_s1 + $0x3e0] sm:$0xff] %v934_v62  ;;  %v938_v0 = vld [vmem:[%s7774_s0 + $0x400] sm:$0xff]  ;;  %v940_v1 = vld [vmem:[%s7774_s0 + $0x410] sm:$0xff]  ;;  %937 = vst [vmem:[%s7775_s1 + $0x3f0] sm:$0xff] %v936_v63 }
  0x22   :  { %939 = vst [vmem:[%s7775_s1 + $0x400] sm:$0xff] %v938_v0  ;;  %941 = vst [vmem:[%s7775_s1 + $0x410] sm:$0xff] %v940_v1  ;;  %v942_v2 = vld [vmem:[%s7774_s0 + $0x420] sm:$0xff]  ;;  %v944_v3 = vld [vmem:[%s7774_s0 + $0x430] sm:$0xff] }
  0x23   :  { %v946_v4 = vld [vmem:[%s7774_s0 + $0x440] sm:$0xff]  ;;  %943 = vst [vmem:[%s7775_s1 + $0x420] sm:$0xff] %v942_v2  ;;  %945 = vst [vmem:[%s7775_s1 + $0x430] sm:$0xff] %v944_v3  ;;  %v948_v5 = vld [vmem:[%s7774_s0 + $0x450] sm:$0xff] }
  0x24   :  { %947 = vst [vmem:[%s7775_s1 + $0x440] sm:$0xff] %v946_v4  ;;  %v950_v6 = vld [vmem:[%s7774_s0 + $0x460] sm:$0xff]  ;;  %v952_v7 = vld [vmem:[%s7774_s0 + $0x470] sm:$0xff]  ;;  %949 = vst [vmem:[%s7775_s1 + $0x450] sm:$0xff] %v948_v5 }
  0x25   :  { %951 = vst [vmem:[%s7775_s1 + $0x460] sm:$0xff] %v950_v6  ;;  %953 = vst [vmem:[%s7775_s1 + $0x470] sm:$0xff] %v952_v7  ;;  %v954_v8 = vld [vmem:[%s7774_s0 + $0x480] sm:$0xff]  ;;  %v956_v9 = vld [vmem:[%s7774_s0 + $0x490] sm:$0xff] }
  0x26   :  { %v958_v10 = vld [vmem:[%s7774_s0 + $0x4a0] sm:$0xff]  ;;  %955 = vst [vmem:[%s7775_s1 + $0x480] sm:$0xff] %v954_v8  ;;  %957 = vst [vmem:[%s7775_s1 + $0x490] sm:$0xff] %v956_v9  ;;  %v960_v11 = vld [vmem:[%s7774_s0 + $0x4b0] sm:$0xff] }
  0x27   :  { %959 = vst [vmem:[%s7775_s1 + $0x4a0] sm:$0xff] %v958_v10  ;;  %v962_v12 = vld [vmem:[%s7774_s0 + $0x4c0] sm:$0xff]  ;;  %v964_v13 = vld [vmem:[%s7774_s0 + $0x4d0] sm:$0xff]  ;;  %961 = vst [vmem:[%s7775_s1 + $0x4b0] sm:$0xff] %v960_v11 }
  0x28   :  { %963 = vst [vmem:[%s7775_s1 + $0x4c0] sm:$0xff] %v962_v12  ;;  %965 = vst [vmem:[%s7775_s1 + $0x4d0] sm:$0xff] %v964_v13  ;;  %v966_v14 = vld [vmem:[%s7774_s0 + $0x4e0] sm:$0xff]  ;;  %v968_v15 = vld [vmem:[%s7774_s0 + $0x4f0] sm:$0xff] }
  0x29   :  { %v970_v16 = vld [vmem:[%s7774_s0 + $0x500] sm:$0xff]  ;;  %967 = vst [vmem:[%s7775_s1 + $0x4e0] sm:$0xff] %v966_v14  ;;  %969 = vst [vmem:[%s7775_s1 + $0x4f0] sm:$0xff] %v968_v15  ;;  %v972_v17 = vld [vmem:[%s7774_s0 + $0x510] sm:$0xff] }
  0x2a   :  { %971 = vst [vmem:[%s7775_s1 + $0x500] sm:$0xff] %v970_v16  ;;  %v974_v18 = vld [vmem:[%s7774_s0 + $0x520] sm:$0xff]  ;;  %v976_v19 = vld [vmem:[%s7774_s0 + $0x530] sm:$0xff]  ;;  %973 = vst [vmem:[%s7775_s1 + $0x510] sm:$0xff] %v972_v17 }
  0x2b   :  { %975 = vst [vmem:[%s7775_s1 + $0x520] sm:$0xff] %v974_v18  ;;  %977 = vst [vmem:[%s7775_s1 + $0x530] sm:$0xff] %v976_v19  ;;  %v978_v20 = vld [vmem:[%s7774_s0 + $0x540] sm:$0xff]  ;;  %v980_v21 = vld [vmem:[%s7774_s0 + $0x550] sm:$0xff] }
  0x2c   :  { %v982_v22 = vld [vmem:[%s7774_s0 + $0x560] sm:$0xff]  ;;  %979 = vst [vmem:[%s7775_s1 + $0x540] sm:$0xff] %v978_v20  ;;  %981 = vst [vmem:[%s7775_s1 + $0x550] sm:$0xff] %v980_v21  ;;  %v984_v23 = vld [vmem:[%s7774_s0 + $0x570] sm:$0xff] }
  0x2d   :  { %983 = vst [vmem:[%s7775_s1 + $0x560] sm:$0xff] %v982_v22  ;;  %v986_v24 = vld [vmem:[%s7774_s0 + $0x580] sm:$0xff]  ;;  %v988_v25 = vld [vmem:[%s7774_s0 + $0x590] sm:$0xff]  ;;  %985 = vst [vmem:[%s7775_s1 + $0x570] sm:$0xff] %v984_v23 }
  0x2e   :  { %987 = vst [vmem:[%s7775_s1 + $0x580] sm:$0xff] %v986_v24  ;;  %989 = vst [vmem:[%s7775_s1 + $0x590] sm:$0xff] %v988_v25  ;;  %v990_v26 = vld [vmem:[%s7774_s0 + $0x5a0] sm:$0xff]  ;;  %v992_v27 = vld [vmem:[%s7774_s0 + $0x5b0] sm:$0xff] }
  0x2f   :  { %v994_v28 = vld [vmem:[%s7774_s0 + $0x5c0] sm:$0xff]  ;;  %991 = vst [vmem:[%s7775_s1 + $0x5a0] sm:$0xff] %v990_v26  ;;  %993 = vst [vmem:[%s7775_s1 + $0x5b0] sm:$0xff] %v992_v27  ;;  %v996_v29 = vld [vmem:[%s7774_s0 + $0x5d0] sm:$0xff] }
  0x30   :  { %995 = vst [vmem:[%s7775_s1 + $0x5c0] sm:$0xff] %v994_v28  ;;  %v998_v30 = vld [vmem:[%s7774_s0 + $0x5e0] sm:$0xff]  ;;  %v1000_v31 = vld [vmem:[%s7774_s0 + $0x5f0] sm:$0xff]  ;;  %997 = vst [vmem:[%s7775_s1 + $0x5d0] sm:$0xff] %v996_v29 }
  0x31   :  { %999 = vst [vmem:[%s7775_s1 + $0x5e0] sm:$0xff] %v998_v30  ;;  %1001 = vst [vmem:[%s7775_s1 + $0x5f0] sm:$0xff] %v1000_v31  ;;  %v1002_v32 = vld [vmem:[%s7774_s0 + $0x600] sm:$0xff]  ;;  %v1004_v33 = vld [vmem:[%s7774_s0 + $0x610] sm:$0xff] }
  0x32   :  { %v1006_v34 = vld [vmem:[%s7774_s0 + $0x620] sm:$0xff]  ;;  %1003 = vst [vmem:[%s7775_s1 + $0x600] sm:$0xff] %v1002_v32  ;;  %1005 = vst [vmem:[%s7775_s1 + $0x610] sm:$0xff] %v1004_v33  ;;  %v1008_v35 = vld [vmem:[%s7774_s0 + $0x630] sm:$0xff] }
  0x33   :  { %1007 = vst [vmem:[%s7775_s1 + $0x620] sm:$0xff] %v1006_v34  ;;  %v1010_v36 = vld [vmem:[%s7774_s0 + $0x640] sm:$0xff]  ;;  %v1012_v37 = vld [vmem:[%s7774_s0 + $0x650] sm:$0xff]  ;;  %1009 = vst [vmem:[%s7775_s1 + $0x630] sm:$0xff] %v1008_v35 }
  0x34   :  { %1011 = vst [vmem:[%s7775_s1 + $0x640] sm:$0xff] %v1010_v36  ;;  %1013 = vst [vmem:[%s7775_s1 + $0x650] sm:$0xff] %v1012_v37  ;;  %v1014_v38 = vld [vmem:[%s7774_s0 + $0x660] sm:$0xff]  ;;  %v1016_v39 = vld [vmem:[%s7774_s0 + $0x670] sm:$0xff] }
  0x35   :  { %v1018_v40 = vld [vmem:[%s7774_s0 + $0x680] sm:$0xff]  ;;  %1015 = vst [vmem:[%s7775_s1 + $0x660] sm:$0xff] %v1014_v38  ;;  %1017 = vst [vmem:[%s7775_s1 + $0x670] sm:$0xff] %v1016_v39  ;;  %v1020_v41 = vld [vmem:[%s7774_s0 + $0x690] sm:$0xff] }
  0x36   :  { %1019 = vst [vmem:[%s7775_s1 + $0x680] sm:$0xff] %v1018_v40  ;;  %v1022_v42 = vld [vmem:[%s7774_s0 + $0x6a0] sm:$0xff]  ;;  %v1024_v43 = vld [vmem:[%s7774_s0 + $0x6b0] sm:$0xff]  ;;  %1021 = vst [vmem:[%s7775_s1 + $0x690] sm:$0xff] %v1020_v41 }
  0x37   :  { %1023 = vst [vmem:[%s7775_s1 + $0x6a0] sm:$0xff] %v1022_v42  ;;  %1025 = vst [vmem:[%s7775_s1 + $0x6b0] sm:$0xff] %v1024_v43  ;;  %v1026_v44 = vld [vmem:[%s7774_s0 + $0x6c0] sm:$0xff]  ;;  %v1028_v45 = vld [vmem:[%s7774_s0 + $0x6d0] sm:$0xff] }
  0x38   :  { %v1030_v46 = vld [vmem:[%s7774_s0 + $0x6e0] sm:$0xff]  ;;  %1027 = vst [vmem:[%s7775_s1 + $0x6c0] sm:$0xff] %v1026_v44  ;;  %1029 = vst [vmem:[%s7775_s1 + $0x6d0] sm:$0xff] %v1028_v45  ;;  %v1032_v47 = vld [vmem:[%s7774_s0 + $0x6f0] sm:$0xff] }
  0x39   :  { %1031 = vst [vmem:[%s7775_s1 + $0x6e0] sm:$0xff] %v1030_v46  ;;  %v1034_v48 = vld [vmem:[%s7774_s0 + $0x700] sm:$0xff]  ;;  %v1036_v49 = vld [vmem:[%s7774_s0 + $0x710] sm:$0xff]  ;;  %1033 = vst [vmem:[%s7775_s1 + $0x6f0] sm:$0xff] %v1032_v47 }
  0x3a   :  { %1035 = vst [vmem:[%s7775_s1 + $0x700] sm:$0xff] %v1034_v48  ;;  %1037 = vst [vmem:[%s7775_s1 + $0x710] sm:$0xff] %v1036_v49  ;;  %v1038_v50 = vld [vmem:[%s7774_s0 + $0x720] sm:$0xff]  ;;  %v1040_v51 = vld [vmem:[%s7774_s0 + $0x730] sm:$0xff] }
  0x3b   :  { %v1042_v52 = vld [vmem:[%s7774_s0 + $0x740] sm:$0xff]  ;;  %1039 = vst [vmem:[%s7775_s1 + $0x720] sm:$0xff] %v1038_v50  ;;  %1041 = vst [vmem:[%s7775_s1 + $0x730] sm:$0xff] %v1040_v51  ;;  %v1044_v53 = vld [vmem:[%s7774_s0 + $0x750] sm:$0xff] }
  0x3c   :  { %1043 = vst [vmem:[%s7775_s1 + $0x740] sm:$0xff] %v1042_v52  ;;  %v1046_v54 = vld [vmem:[%s7774_s0 + $0x760] sm:$0xff]  ;;  %v1048_v55 = vld [vmem:[%s7774_s0 + $0x770] sm:$0xff]  ;;  %1045 = vst [vmem:[%s7775_s1 + $0x750] sm:$0xff] %v1044_v53 }
  0x3d   :  { %1047 = vst [vmem:[%s7775_s1 + $0x760] sm:$0xff] %v1046_v54  ;;  %1049 = vst [vmem:[%s7775_s1 + $0x770] sm:$0xff] %v1048_v55  ;;  %v1050_v56 = vld [vmem:[%s7774_s0 + $0x780] sm:$0xff]  ;;  %v1052_v57 = vld [vmem:[%s7774_s0 + $0x790] sm:$0xff] }
  0x3e   :  { %v1054_v58 = vld [vmem:[%s7774_s0 + $0x7a0] sm:$0xff]  ;;  %1051 = vst [vmem:[%s7775_s1 + $0x780] sm:$0xff] %v1050_v56  ;;  %1053 = vst [vmem:[%s7775_s1 + $0x790] sm:$0xff] %v1052_v57  ;;  %v1056_v59 = vld [vmem:[%s7774_s0 + $0x7b0] sm:$0xff] }
  0x3f   :  { %1055 = vst [vmem:[%s7775_s1 + $0x7a0] sm:$0xff] %v1054_v58  ;;  %v1058_v60 = vld [vmem:[%s7774_s0 + $0x7c0] sm:$0xff]  ;;  %v1060_v61 = vld [vmem:[%s7774_s0 + $0x7d0] sm:$0xff]  ;;  %1057 = vst [vmem:[%s7775_s1 + $0x7b0] sm:$0xff] %v1056_v59 }
  0x40   :  { %1059 = vst [vmem:[%s7775_s1 + $0x7c0] sm:$0xff] %v1058_v60  ;;  %1061 = vst [vmem:[%s7775_s1 + $0x7d0] sm:$0xff] %v1060_v61  ;;  %v1062_v62 = vld [vmem:[%s7774_s0 + $0x7e0] sm:$0xff]  ;;  %v1064_v63 = vld [vmem:[%s7774_s0 + $0x7f0] sm:$0xff] }
  0x41   :  { %v1066_v0 = vld [vmem:[%s7774_s0 + $0x800] sm:$0xff]  ;;  %1063 = vst [vmem:[%s7775_s1 + $0x7e0] sm:$0xff] %v1062_v62  ;;  %1065 = vst [vmem:[%s7775_s1 + $0x7f0] sm:$0xff] %v1064_v63  ;;  %v1068_v1 = vld [vmem:[%s7774_s0 + $0x810] sm:$0xff] }
  0x42   :  { %1067 = vst [vmem:[%s7775_s1 + $0x800] sm:$0xff] %v1066_v0  ;;  %v1070_v2 = vld [vmem:[%s7774_s0 + $0x820] sm:$0xff]  ;;  %v1072_v3 = vld [vmem:[%s7774_s0 + $0x830] sm:$0xff]  ;;  %1069 = vst [vmem:[%s7775_s1 + $0x810] sm:$0xff] %v1068_v1 }
  0x43   :  { %1071 = vst [vmem:[%s7775_s1 + $0x820] sm:$0xff] %v1070_v2  ;;  %1073 = vst [vmem:[%s7775_s1 + $0x830] sm:$0xff] %v1072_v3  ;;  %v1074_v4 = vld [vmem:[%s7774_s0 + $0x840] sm:$0xff]  ;;  %v1076_v5 = vld [vmem:[%s7774_s0 + $0x850] sm:$0xff] }
  0x44   :  { %v1078_v6 = vld [vmem:[%s7774_s0 + $0x860] sm:$0xff]  ;;  %1075 = vst [vmem:[%s7775_s1 + $0x840] sm:$0xff] %v1074_v4  ;;  %1077 = vst [vmem:[%s7775_s1 + $0x850] sm:$0xff] %v1076_v5  ;;  %v1080_v7 = vld [vmem:[%s7774_s0 + $0x870] sm:$0xff] }
  0x45   :  { %1079 = vst [vmem:[%s7775_s1 + $0x860] sm:$0xff] %v1078_v6  ;;  %v1082_v8 = vld [vmem:[%s7774_s0 + $0x880] sm:$0xff]  ;;  %v1084_v9 = vld [vmem:[%s7774_s0 + $0x890] sm:$0xff]  ;;  %1081 = vst [vmem:[%s7775_s1 + $0x870] sm:$0xff] %v1080_v7 }
  0x46   :  { %1083 = vst [vmem:[%s7775_s1 + $0x880] sm:$0xff] %v1082_v8  ;;  %1085 = vst [vmem:[%s7775_s1 + $0x890] sm:$0xff] %v1084_v9  ;;  %v1086_v10 = vld [vmem:[%s7774_s0 + $0x8a0] sm:$0xff]  ;;  %v1088_v11 = vld [vmem:[%s7774_s0 + $0x8b0] sm:$0xff] }
  0x47   :  { %v1090_v12 = vld [vmem:[%s7774_s0 + $0x8c0] sm:$0xff]  ;;  %1087 = vst [vmem:[%s7775_s1 + $0x8a0] sm:$0xff] %v1086_v10  ;;  %1089 = vst [vmem:[%s7775_s1 + $0x8b0] sm:$0xff] %v1088_v11  ;;  %v1092_v13 = vld [vmem:[%s7774_s0 + $0x8d0] sm:$0xff] }
  0x48   :  { %1091 = vst [vmem:[%s7775_s1 + $0x8c0] sm:$0xff] %v1090_v12  ;;  %v1094_v14 = vld [vmem:[%s7774_s0 + $0x8e0] sm:$0xff]  ;;  %v1096_v15 = vld [vmem:[%s7774_s0 + $0x8f0] sm:$0xff]  ;;  %1093 = vst [vmem:[%s7775_s1 + $0x8d0] sm:$0xff] %v1092_v13 }
  0x49   :  { %1095 = vst [vmem:[%s7775_s1 + $0x8e0] sm:$0xff] %v1094_v14  ;;  %1097 = vst [vmem:[%s7775_s1 + $0x8f0] sm:$0xff] %v1096_v15  ;;  %v1098_v16 = vld [vmem:[%s7774_s0 + $0x900] sm:$0xff]  ;;  %v1100_v17 = vld [vmem:[%s7774_s0 + $0x910] sm:$0xff] }
  0x4a   :  { %v1102_v18 = vld [vmem:[%s7774_s0 + $0x920] sm:$0xff]  ;;  %1099 = vst [vmem:[%s7775_s1 + $0x900] sm:$0xff] %v1098_v16  ;;  %1101 = vst [vmem:[%s7775_s1 + $0x910] sm:$0xff] %v1100_v17  ;;  %v1104_v19 = vld [vmem:[%s7774_s0 + $0x930] sm:$0xff] }
  0x4b   :  { %1103 = vst [vmem:[%s7775_s1 + $0x920] sm:$0xff] %v1102_v18  ;;  %v1106_v20 = vld [vmem:[%s7774_s0 + $0x940] sm:$0xff]  ;;  %v1108_v21 = vld [vmem:[%s7774_s0 + $0x950] sm:$0xff]  ;;  %1105 = vst [vmem:[%s7775_s1 + $0x930] sm:$0xff] %v1104_v19 }
  0x4c   :  { %1107 = vst [vmem:[%s7775_s1 + $0x940] sm:$0xff] %v1106_v20  ;;  %1109 = vst [vmem:[%s7775_s1 + $0x950] sm:$0xff] %v1108_v21  ;;  %v1110_v22 = vld [vmem:[%s7774_s0 + $0x960] sm:$0xff]  ;;  %v1112_v23 = vld [vmem:[%s7774_s0 + $0x970] sm:$0xff] }
  0x4d   :  { %v1114_v24 = vld [vmem:[%s7774_s0 + $0x980] sm:$0xff]  ;;  %1111 = vst [vmem:[%s7775_s1 + $0x960] sm:$0xff] %v1110_v22  ;;  %1113 = vst [vmem:[%s7775_s1 + $0x970] sm:$0xff] %v1112_v23  ;;  %v1116_v25 = vld [vmem:[%s7774_s0 + $0x990] sm:$0xff] }
  0x4e   :  { %1115 = vst [vmem:[%s7775_s1 + $0x980] sm:$0xff] %v1114_v24  ;;  %v1118_v26 = vld [vmem:[%s7774_s0 + $0x9a0] sm:$0xff]  ;;  %v1120_v27 = vld [vmem:[%s7774_s0 + $0x9b0] sm:$0xff]  ;;  %1117 = vst [vmem:[%s7775_s1 + $0x990] sm:$0xff] %v1116_v25 }
  0x4f   :  { %1119 = vst [vmem:[%s7775_s1 + $0x9a0] sm:$0xff] %v1118_v26  ;;  %1121 = vst [vmem:[%s7775_s1 + $0x9b0] sm:$0xff] %v1120_v27  ;;  %v1122_v28 = vld [vmem:[%s7774_s0 + $0x9c0] sm:$0xff]  ;;  %v1124_v29 = vld [vmem:[%s7774_s0 + $0x9d0] sm:$0xff] }
  0x50   :  { %v1126_v30 = vld [vmem:[%s7774_s0 + $0x9e0] sm:$0xff]  ;;  %1123 = vst [vmem:[%s7775_s1 + $0x9c0] sm:$0xff] %v1122_v28  ;;  %1125 = vst [vmem:[%s7775_s1 + $0x9d0] sm:$0xff] %v1124_v29  ;;  %v1128_v31 = vld [vmem:[%s7774_s0 + $0x9f0] sm:$0xff] }
  0x51   :  { %1127 = vst [vmem:[%s7775_s1 + $0x9e0] sm:$0xff] %v1126_v30  ;;  %v1130_v32 = vld [vmem:[%s7774_s0 + $0xa00] sm:$0xff]  ;;  %v1132_v33 = vld [vmem:[%s7774_s0 + $0xa10] sm:$0xff]  ;;  %1129 = vst [vmem:[%s7775_s1 + $0x9f0] sm:$0xff] %v1128_v31 }
  0x52   :  { %1131 = vst [vmem:[%s7775_s1 + $0xa00] sm:$0xff] %v1130_v32  ;;  %1133 = vst [vmem:[%s7775_s1 + $0xa10] sm:$0xff] %v1132_v33  ;;  %v1134_v34 = vld [vmem:[%s7774_s0 + $0xa20] sm:$0xff]  ;;  %v1136_v35 = vld [vmem:[%s7774_s0 + $0xa30] sm:$0xff] }
  0x53   :  { %v1138_v36 = vld [vmem:[%s7774_s0 + $0xa40] sm:$0xff]  ;;  %1135 = vst [vmem:[%s7775_s1 + $0xa20] sm:$0xff] %v1134_v34  ;;  %1137 = vst [vmem:[%s7775_s1 + $0xa30] sm:$0xff] %v1136_v35  ;;  %v1140_v37 = vld [vmem:[%s7774_s0 + $0xa50] sm:$0xff] }
  0x54   :  { %1139 = vst [vmem:[%s7775_s1 + $0xa40] sm:$0xff] %v1138_v36  ;;  %v1142_v38 = vld [vmem:[%s7774_s0 + $0xa60] sm:$0xff]  ;;  %v1144_v39 = vld [vmem:[%s7774_s0 + $0xa70] sm:$0xff]  ;;  %1141 = vst [vmem:[%s7775_s1 + $0xa50] sm:$0xff] %v1140_v37 }
  0x55   :  { %1143 = vst [vmem:[%s7775_s1 + $0xa60] sm:$0xff] %v1142_v38  ;;  %1145 = vst [vmem:[%s7775_s1 + $0xa70] sm:$0xff] %v1144_v39  ;;  %v1146_v40 = vld [vmem:[%s7774_s0 + $0xa80] sm:$0xff]  ;;  %v1148_v41 = vld [vmem:[%s7774_s0 + $0xa90] sm:$0xff] }
  0x56   :  { %v1150_v42 = vld [vmem:[%s7774_s0 + $0xaa0] sm:$0xff]  ;;  %1147 = vst [vmem:[%s7775_s1 + $0xa80] sm:$0xff] %v1146_v40  ;;  %1149 = vst [vmem:[%s7775_s1 + $0xa90] sm:$0xff] %v1148_v41  ;;  %v1152_v43 = vld [vmem:[%s7774_s0 + $0xab0] sm:$0xff] }
  0x57   :  { %1151 = vst [vmem:[%s7775_s1 + $0xaa0] sm:$0xff] %v1150_v42  ;;  %v1154_v44 = vld [vmem:[%s7774_s0 + $0xac0] sm:$0xff]  ;;  %v1156_v45 = vld [vmem:[%s7774_s0 + $0xad0] sm:$0xff]  ;;  %1153 = vst [vmem:[%s7775_s1 + $0xab0] sm:$0xff] %v1152_v43 }
  0x58   :  { %1155 = vst [vmem:[%s7775_s1 + $0xac0] sm:$0xff] %v1154_v44  ;;  %1157 = vst [vmem:[%s7775_s1 + $0xad0] sm:$0xff] %v1156_v45  ;;  %v1158_v46 = vld [vmem:[%s7774_s0 + $0xae0] sm:$0xff]  ;;  %v1160_v47 = vld [vmem:[%s7774_s0 + $0xaf0] sm:$0xff] }
  0x59   :  { %v1162_v48 = vld [vmem:[%s7774_s0 + $0xb00] sm:$0xff]  ;;  %1159 = vst [vmem:[%s7775_s1 + $0xae0] sm:$0xff] %v1158_v46  ;;  %1161 = vst [vmem:[%s7775_s1 + $0xaf0] sm:$0xff] %v1160_v47  ;;  %v1164_v49 = vld [vmem:[%s7774_s0 + $0xb10] sm:$0xff] }
  0x5a   :  { %1163 = vst [vmem:[%s7775_s1 + $0xb00] sm:$0xff] %v1162_v48  ;;  %v1166_v50 = vld [vmem:[%s7774_s0 + $0xb20] sm:$0xff]  ;;  %v1168_v51 = vld [vmem:[%s7774_s0 + $0xb30] sm:$0xff]  ;;  %1165 = vst [vmem:[%s7775_s1 + $0xb10] sm:$0xff] %v1164_v49 }
  0x5b   :  { %1167 = vst [vmem:[%s7775_s1 + $0xb20] sm:$0xff] %v1166_v50  ;;  %1169 = vst [vmem:[%s7775_s1 + $0xb30] sm:$0xff] %v1168_v51  ;;  %v1170_v52 = vld [vmem:[%s7774_s0 + $0xb40] sm:$0xff]  ;;  %v1172_v53 = vld [vmem:[%s7774_s0 + $0xb50] sm:$0xff] }
  0x5c   :  { %v1174_v54 = vld [vmem:[%s7774_s0 + $0xb60] sm:$0xff]  ;;  %1171 = vst [vmem:[%s7775_s1 + $0xb40] sm:$0xff] %v1170_v52  ;;  %1173 = vst [vmem:[%s7775_s1 + $0xb50] sm:$0xff] %v1172_v53  ;;  %v1176_v55 = vld [vmem:[%s7774_s0 + $0xb70] sm:$0xff] }
  0x5d   :  { %1175 = vst [vmem:[%s7775_s1 + $0xb60] sm:$0xff] %v1174_v54  ;;  %v1178_v56 = vld [vmem:[%s7774_s0 + $0xb80] sm:$0xff]  ;;  %v1180_v57 = vld [vmem:[%s7774_s0 + $0xb90] sm:$0xff]  ;;  %1177 = vst [vmem:[%s7775_s1 + $0xb70] sm:$0xff] %v1176_v55 }
  0x5e   :  { %1179 = vst [vmem:[%s7775_s1 + $0xb80] sm:$0xff] %v1178_v56  ;;  %1181 = vst [vmem:[%s7775_s1 + $0xb90] sm:$0xff] %v1180_v57  ;;  %v1182_v58 = vld [vmem:[%s7774_s0 + $0xba0] sm:$0xff]  ;;  %v1184_v59 = vld [vmem:[%s7774_s0 + $0xbb0] sm:$0xff] }
  0x5f   :  { %v1186_v60 = vld [vmem:[%s7774_s0 + $0xbc0] sm:$0xff]  ;;  %1183 = vst [vmem:[%s7775_s1 + $0xba0] sm:$0xff] %v1182_v58  ;;  %1185 = vst [vmem:[%s7775_s1 + $0xbb0] sm:$0xff] %v1184_v59  ;;  %v1188_v61 = vld [vmem:[%s7774_s0 + $0xbd0] sm:$0xff] }
  0x60   :  { %1187 = vst [vmem:[%s7775_s1 + $0xbc0] sm:$0xff] %v1186_v60  ;;  %v1190_v62 = vld [vmem:[%s7774_s0 + $0xbe0] sm:$0xff]  ;;  %v1192_v63 = vld [vmem:[%s7774_s0 + $0xbf0] sm:$0xff]  ;;  %1189 = vst [vmem:[%s7775_s1 + $0xbd0] sm:$0xff] %v1188_v61 }
  0x61   :  { %1191 = vst [vmem:[%s7775_s1 + $0xbe0] sm:$0xff] %v1190_v62  ;;  %1193 = vst [vmem:[%s7775_s1 + $0xbf0] sm:$0xff] %v1192_v63  ;;  %v1194_v0 = vld [vmem:[%s7774_s0 + $0xc00] sm:$0xff]  ;;  %v1196_v1 = vld [vmem:[%s7774_s0 + $0xc10] sm:$0xff] }
  0x62   :  { %v1198_v2 = vld [vmem:[%s7774_s0 + $0xc20] sm:$0xff]  ;;  %1195 = vst [vmem:[%s7775_s1 + $0xc00] sm:$0xff] %v1194_v0  ;;  %1197 = vst [vmem:[%s7775_s1 + $0xc10] sm:$0xff] %v1196_v1  ;;  %v1200_v3 = vld [vmem:[%s7774_s0 + $0xc30] sm:$0xff] }
  0x63   :  { %1199 = vst [vmem:[%s7775_s1 + $0xc20] sm:$0xff] %v1198_v2  ;;  %v1202_v4 = vld [vmem:[%s7774_s0 + $0xc40] sm:$0xff]  ;;  %v1204_v5 = vld [vmem:[%s7774_s0 + $0xc50] sm:$0xff]  ;;  %1201 = vst [vmem:[%s7775_s1 + $0xc30] sm:$0xff] %v1200_v3 }
  0x64   :  { %1203 = vst [vmem:[%s7775_s1 + $0xc40] sm:$0xff] %v1202_v4  ;;  %1205 = vst [vmem:[%s7775_s1 + $0xc50] sm:$0xff] %v1204_v5  ;;  %v1206_v6 = vld [vmem:[%s7774_s0 + $0xc60] sm:$0xff]  ;;  %v1208_v7 = vld [vmem:[%s7774_s0 + $0xc70] sm:$0xff] }
  0x65   :  { %v1210_v8 = vld [vmem:[%s7774_s0 + $0xc80] sm:$0xff]  ;;  %1207 = vst [vmem:[%s7775_s1 + $0xc60] sm:$0xff] %v1206_v6  ;;  %1209 = vst [vmem:[%s7775_s1 + $0xc70] sm:$0xff] %v1208_v7  ;;  %v1212_v9 = vld [vmem:[%s7774_s0 + $0xc90] sm:$0xff] }
  0x66   :  { %1211 = vst [vmem:[%s7775_s1 + $0xc80] sm:$0xff] %v1210_v8  ;;  %v1214_v10 = vld [vmem:[%s7774_s0 + $0xca0] sm:$0xff]  ;;  %v1216_v11 = vld [vmem:[%s7774_s0 + $0xcb0] sm:$0xff]  ;;  %1213 = vst [vmem:[%s7775_s1 + $0xc90] sm:$0xff] %v1212_v9 }
  0x67   :  { %1215 = vst [vmem:[%s7775_s1 + $0xca0] sm:$0xff] %v1214_v10  ;;  %1217 = vst [vmem:[%s7775_s1 + $0xcb0] sm:$0xff] %v1216_v11  ;;  %v1218_v12 = vld [vmem:[%s7774_s0 + $0xcc0] sm:$0xff]  ;;  %v1220_v13 = vld [vmem:[%s7774_s0 + $0xcd0] sm:$0xff] }
  0x68   :  { %v1222_v14 = vld [vmem:[%s7774_s0 + $0xce0] sm:$0xff]  ;;  %1219 = vst [vmem:[%s7775_s1 + $0xcc0] sm:$0xff] %v1218_v12  ;;  %1221 = vst [vmem:[%s7775_s1 + $0xcd0] sm:$0xff] %v1220_v13  ;;  %v1224_v15 = vld [vmem:[%s7774_s0 + $0xcf0] sm:$0xff] }
  0x69   :  { %1223 = vst [vmem:[%s7775_s1 + $0xce0] sm:$0xff] %v1222_v14  ;;  %v1226_v16 = vld [vmem:[%s7774_s0 + $0xd00] sm:$0xff]  ;;  %v1228_v17 = vld [vmem:[%s7774_s0 + $0xd10] sm:$0xff]  ;;  %1225 = vst [vmem:[%s7775_s1 + $0xcf0] sm:$0xff] %v1224_v15 }
  0x6a   :  { %1227 = vst [vmem:[%s7775_s1 + $0xd00] sm:$0xff] %v1226_v16  ;;  %1229 = vst [vmem:[%s7775_s1 + $0xd10] sm:$0xff] %v1228_v17  ;;  %v1230_v18 = vld [vmem:[%s7774_s0 + $0xd20] sm:$0xff]  ;;  %v1232_v19 = vld [vmem:[%s7774_s0 + $0xd30] sm:$0xff] }
  0x6b   :  { %v1234_v20 = vld [vmem:[%s7774_s0 + $0xd40] sm:$0xff]  ;;  %1231 = vst [vmem:[%s7775_s1 + $0xd20] sm:$0xff] %v1230_v18  ;;  %1233 = vst [vmem:[%s7775_s1 + $0xd30] sm:$0xff] %v1232_v19  ;;  %v1236_v21 = vld [vmem:[%s7774_s0 + $0xd50] sm:$0xff] }
  0x6c   :  { %1235 = vst [vmem:[%s7775_s1 + $0xd40] sm:$0xff] %v1234_v20  ;;  %v1238_v22 = vld [vmem:[%s7774_s0 + $0xd60] sm:$0xff]  ;;  %v1240_v23 = vld [vmem:[%s7774_s0 + $0xd70] sm:$0xff]  ;;  %1237 = vst [vmem:[%s7775_s1 + $0xd50] sm:$0xff] %v1236_v21 }
  0x6d   :  { %1239 = vst [vmem:[%s7775_s1 + $0xd60] sm:$0xff] %v1238_v22  ;;  %1241 = vst [vmem:[%s7775_s1 + $0xd70] sm:$0xff] %v1240_v23  ;;  %v1242_v24 = vld [vmem:[%s7774_s0 + $0xd80] sm:$0xff]  ;;  %v1244_v25 = vld [vmem:[%s7774_s0 + $0xd90] sm:$0xff] }
  0x6e   :  { %v1246_v26 = vld [vmem:[%s7774_s0 + $0xda0] sm:$0xff]  ;;  %1243 = vst [vmem:[%s7775_s1 + $0xd80] sm:$0xff] %v1242_v24  ;;  %1245 = vst [vmem:[%s7775_s1 + $0xd90] sm:$0xff] %v1244_v25  ;;  %v1248_v27 = vld [vmem:[%s7774_s0 + $0xdb0] sm:$0xff] }
  0x6f   :  { %1247 = vst [vmem:[%s7775_s1 + $0xda0] sm:$0xff] %v1246_v26  ;;  %v1250_v28 = vld [vmem:[%s7774_s0 + $0xdc0] sm:$0xff]  ;;  %v1252_v29 = vld [vmem:[%s7774_s0 + $0xdd0] sm:$0xff]  ;;  %1249 = vst [vmem:[%s7775_s1 + $0xdb0] sm:$0xff] %v1248_v27 }
  0x70   :  { %1251 = vst [vmem:[%s7775_s1 + $0xdc0] sm:$0xff] %v1250_v28  ;;  %1253 = vst [vmem:[%s7775_s1 + $0xdd0] sm:$0xff] %v1252_v29  ;;  %v1254_v30 = vld [vmem:[%s7774_s0 + $0xde0] sm:$0xff]  ;;  %v1256_v31 = vld [vmem:[%s7774_s0 + $0xdf0] sm:$0xff] }
  0x71   :  { %v1258_v32 = vld [vmem:[%s7774_s0 + $0xe00] sm:$0xff]  ;;  %1255 = vst [vmem:[%s7775_s1 + $0xde0] sm:$0xff] %v1254_v30  ;;  %1257 = vst [vmem:[%s7775_s1 + $0xdf0] sm:$0xff] %v1256_v31  ;;  %v1260_v33 = vld [vmem:[%s7774_s0 + $0xe10] sm:$0xff] }
  0x72   :  { %1259 = vst [vmem:[%s7775_s1 + $0xe00] sm:$0xff] %v1258_v32  ;;  %v1262_v34 = vld [vmem:[%s7774_s0 + $0xe20] sm:$0xff]  ;;  %v1264_v35 = vld [vmem:[%s7774_s0 + $0xe30] sm:$0xff]  ;;  %1261 = vst [vmem:[%s7775_s1 + $0xe10] sm:$0xff] %v1260_v33 }
  0x73   :  { %1263 = vst [vmem:[%s7775_s1 + $0xe20] sm:$0xff] %v1262_v34  ;;  %1265 = vst [vmem:[%s7775_s1 + $0xe30] sm:$0xff] %v1264_v35  ;;  %v1266_v36 = vld [vmem:[%s7774_s0 + $0xe40] sm:$0xff]  ;;  %v1268_v37 = vld [vmem:[%s7774_s0 + $0xe50] sm:$0xff] }
  0x74   :  { %v1270_v38 = vld [vmem:[%s7774_s0 + $0xe60] sm:$0xff]  ;;  %1267 = vst [vmem:[%s7775_s1 + $0xe40] sm:$0xff] %v1266_v36  ;;  %1269 = vst [vmem:[%s7775_s1 + $0xe50] sm:$0xff] %v1268_v37  ;;  %v1272_v39 = vld [vmem:[%s7774_s0 + $0xe70] sm:$0xff] }
  0x75   :  { %1271 = vst [vmem:[%s7775_s1 + $0xe60] sm:$0xff] %v1270_v38  ;;  %v1274_v40 = vld [vmem:[%s7774_s0 + $0xe80] sm:$0xff]  ;;  %v1276_v41 = vld [vmem:[%s7774_s0 + $0xe90] sm:$0xff]  ;;  %1273 = vst [vmem:[%s7775_s1 + $0xe70] sm:$0xff] %v1272_v39 }
  0x76   :  { %1275 = vst [vmem:[%s7775_s1 + $0xe80] sm:$0xff] %v1274_v40  ;;  %1277 = vst [vmem:[%s7775_s1 + $0xe90] sm:$0xff] %v1276_v41  ;;  %v1278_v42 = vld [vmem:[%s7774_s0 + $0xea0] sm:$0xff]  ;;  %v1280_v43 = vld [vmem:[%s7774_s0 + $0xeb0] sm:$0xff] }
  0x77   :  { %v1282_v44 = vld [vmem:[%s7774_s0 + $0xec0] sm:$0xff]  ;;  %1279 = vst [vmem:[%s7775_s1 + $0xea0] sm:$0xff] %v1278_v42  ;;  %1281 = vst [vmem:[%s7775_s1 + $0xeb0] sm:$0xff] %v1280_v43  ;;  %v1284_v45 = vld [vmem:[%s7774_s0 + $0xed0] sm:$0xff] }
  0x78   :  { %1283 = vst [vmem:[%s7775_s1 + $0xec0] sm:$0xff] %v1282_v44  ;;  %v1286_v46 = vld [vmem:[%s7774_s0 + $0xee0] sm:$0xff]  ;;  %v1288_v47 = vld [vmem:[%s7774_s0 + $0xef0] sm:$0xff]  ;;  %1285 = vst [vmem:[%s7775_s1 + $0xed0] sm:$0xff] %v1284_v45 }
  0x79   :  { %1287 = vst [vmem:[%s7775_s1 + $0xee0] sm:$0xff] %v1286_v46  ;;  %1289 = vst [vmem:[%s7775_s1 + $0xef0] sm:$0xff] %v1288_v47  ;;  %v1290_v48 = vld [vmem:[%s7774_s0 + $0xf00] sm:$0xff]  ;;  %v1292_v49 = vld [vmem:[%s7774_s0 + $0xf10] sm:$0xff] }
  0x7a   :  { %v1294_v50 = vld [vmem:[%s7774_s0 + $0xf20] sm:$0xff]  ;;  %1291 = vst [vmem:[%s7775_s1 + $0xf00] sm:$0xff] %v1290_v48  ;;  %1293 = vst [vmem:[%s7775_s1 + $0xf10] sm:$0xff] %v1292_v49  ;;  %v1296_v51 = vld [vmem:[%s7774_s0 + $0xf30] sm:$0xff] }
  0x7b   :  { %1295 = vst [vmem:[%s7775_s1 + $0xf20] sm:$0xff] %v1294_v50  ;;  %v1298_v52 = vld [vmem:[%s7774_s0 + $0xf40] sm:$0xff]  ;;  %v1300_v53 = vld [vmem:[%s7774_s0 + $0xf50] sm:$0xff]  ;;  %1297 = vst [vmem:[%s7775_s1 + $0xf30] sm:$0xff] %v1296_v51 }
  0x7c   :  { %1299 = vst [vmem:[%s7775_s1 + $0xf40] sm:$0xff] %v1298_v52  ;;  %1301 = vst [vmem:[%s7775_s1 + $0xf50] sm:$0xff] %v1300_v53  ;;  %v1302_v54 = vld [vmem:[%s7774_s0 + $0xf60] sm:$0xff]  ;;  %v1304_v55 = vld [vmem:[%s7774_s0 + $0xf70] sm:$0xff] }
  0x7d   :  { %v1306_v56 = vld [vmem:[%s7774_s0 + $0xf80] sm:$0xff]  ;;  %1303 = vst [vmem:[%s7775_s1 + $0xf60] sm:$0xff] %v1302_v54  ;;  %1305 = vst [vmem:[%s7775_s1 + $0xf70] sm:$0xff] %v1304_v55  ;;  %v1308_v57 = vld [vmem:[%s7774_s0 + $0xf90] sm:$0xff] }
  0x7e   :  { %1307 = vst [vmem:[%s7775_s1 + $0xf80] sm:$0xff] %v1306_v56  ;;  %v1310_v58 = vld [vmem:[%s7774_s0 + $0xfa0] sm:$0xff]  ;;  %v1312_v59 = vld [vmem:[%s7774_s0 + $0xfb0] sm:$0xff]  ;;  %1309 = vst [vmem:[%s7775_s1 + $0xf90] sm:$0xff] %v1308_v57 }
  0x7f   :  { %1311 = vst [vmem:[%s7775_s1 + $0xfa0] sm:$0xff] %v1310_v58  ;;  %1313 = vst [vmem:[%s7775_s1 + $0xfb0] sm:$0xff] %v1312_v59  ;;  %v1314_v60 = vld [vmem:[%s7774_s0 + $0xfc0] sm:$0xff]  ;;  %v1316_v61 = vld [vmem:[%s7774_s0 + $0xfd0] sm:$0xff] }
  0x80   :  { %v1318_v62 = vld [vmem:[%s7774_s0 + $0xfe0] sm:$0xff]  ;;  %1315 = vst [vmem:[%s7775_s1 + $0xfc0] sm:$0xff] %v1314_v60  ;;  %1317 = vst [vmem:[%s7775_s1 + $0xfd0] sm:$0xff] %v1316_v61  ;;  %v1320_v63 = vld [vmem:[%s7774_s0 + $0xff0] sm:$0xff] }
  0x81   :  { %1319 = vst [vmem:[%s7775_s1 + $0xfe0] sm:$0xff] %v1318_v62  ;;  %v1322_v0 = vld [vmem:[%s7774_s0 + $0x1000] sm:$0xff]  ;;  %v1324_v1 = vld [vmem:[%s7774_s0 + $0x1010] sm:$0xff]  ;;  %1321 = vst [vmem:[%s7775_s1 + $0xff0] sm:$0xff] %v1320_v63 }
  0x82   :  { %1323 = vst [vmem:[%s7775_s1 + $0x1000] sm:$0xff] %v1322_v0  ;;  %1325 = vst [vmem:[%s7775_s1 + $0x1010] sm:$0xff] %v1324_v1  ;;  %v1326_v2 = vld [vmem:[%s7774_s0 + $0x1020] sm:$0xff]  ;;  %v1328_v3 = vld [vmem:[%s7774_s0 + $0x1030] sm:$0xff] }
  0x83   :  { %v1330_v4 = vld [vmem:[%s7774_s0 + $0x1040] sm:$0xff]  ;;  %1327 = vst [vmem:[%s7775_s1 + $0x1020] sm:$0xff] %v1326_v2  ;;  %1329 = vst [vmem:[%s7775_s1 + $0x1030] sm:$0xff] %v1328_v3  ;;  %v1332_v5 = vld [vmem:[%s7774_s0 + $0x1050] sm:$0xff] }
  0x84   :  { %1331 = vst [vmem:[%s7775_s1 + $0x1040] sm:$0xff] %v1330_v4  ;;  %v1334_v6 = vld [vmem:[%s7774_s0 + $0x1060] sm:$0xff]  ;;  %v1336_v7 = vld [vmem:[%s7774_s0 + $0x1070] sm:$0xff]  ;;  %1333 = vst [vmem:[%s7775_s1 + $0x1050] sm:$0xff] %v1332_v5 }
  0x85   :  { %1335 = vst [vmem:[%s7775_s1 + $0x1060] sm:$0xff] %v1334_v6  ;;  %1337 = vst [vmem:[%s7775_s1 + $0x1070] sm:$0xff] %v1336_v7  ;;  %v1338_v8 = vld [vmem:[%s7774_s0 + $0x1080] sm:$0xff]  ;;  %v1340_v9 = vld [vmem:[%s7774_s0 + $0x1090] sm:$0xff] }
  0x86   :  { %v1342_v10 = vld [vmem:[%s7774_s0 + $0x10a0] sm:$0xff]  ;;  %1339 = vst [vmem:[%s7775_s1 + $0x1080] sm:$0xff] %v1338_v8  ;;  %1341 = vst [vmem:[%s7775_s1 + $0x1090] sm:$0xff] %v1340_v9  ;;  %v1344_v11 = vld [vmem:[%s7774_s0 + $0x10b0] sm:$0xff] }
  0x87   :  { %1343 = vst [vmem:[%s7775_s1 + $0x10a0] sm:$0xff] %v1342_v10  ;;  %v1346_v12 = vld [vmem:[%s7774_s0 + $0x10c0] sm:$0xff]  ;;  %v1348_v13 = vld [vmem:[%s7774_s0 + $0x10d0] sm:$0xff]  ;;  %1345 = vst [vmem:[%s7775_s1 + $0x10b0] sm:$0xff] %v1344_v11 }
  0x88   :  { %1347 = vst [vmem:[%s7775_s1 + $0x10c0] sm:$0xff] %v1346_v12  ;;  %1349 = vst [vmem:[%s7775_s1 + $0x10d0] sm:$0xff] %v1348_v13  ;;  %v1350_v14 = vld [vmem:[%s7774_s0 + $0x10e0] sm:$0xff]  ;;  %v1352_v15 = vld [vmem:[%s7774_s0 + $0x10f0] sm:$0xff] }
  0x89   :  { %v1354_v16 = vld [vmem:[%s7774_s0 + $0x1100] sm:$0xff]  ;;  %1351 = vst [vmem:[%s7775_s1 + $0x10e0] sm:$0xff] %v1350_v14  ;;  %1353 = vst [vmem:[%s7775_s1 + $0x10f0] sm:$0xff] %v1352_v15  ;;  %v1356_v17 = vld [vmem:[%s7774_s0 + $0x1110] sm:$0xff] }
  0x8a   :  { %1355 = vst [vmem:[%s7775_s1 + $0x1100] sm:$0xff] %v1354_v16  ;;  %v1358_v18 = vld [vmem:[%s7774_s0 + $0x1120] sm:$0xff]  ;;  %v1360_v19 = vld [vmem:[%s7774_s0 + $0x1130] sm:$0xff]  ;;  %1357 = vst [vmem:[%s7775_s1 + $0x1110] sm:$0xff] %v1356_v17 }
  0x8b   :  { %1359 = vst [vmem:[%s7775_s1 + $0x1120] sm:$0xff] %v1358_v18  ;;  %1361 = vst [vmem:[%s7775_s1 + $0x1130] sm:$0xff] %v1360_v19  ;;  %v1362_v20 = vld [vmem:[%s7774_s0 + $0x1140] sm:$0xff]  ;;  %v1364_v21 = vld [vmem:[%s7774_s0 + $0x1150] sm:$0xff] }
  0x8c   :  { %v1366_v22 = vld [vmem:[%s7774_s0 + $0x1160] sm:$0xff]  ;;  %1363 = vst [vmem:[%s7775_s1 + $0x1140] sm:$0xff] %v1362_v20  ;;  %1365 = vst [vmem:[%s7775_s1 + $0x1150] sm:$0xff] %v1364_v21  ;;  %v1368_v23 = vld [vmem:[%s7774_s0 + $0x1170] sm:$0xff] }
  0x8d   :  { %1367 = vst [vmem:[%s7775_s1 + $0x1160] sm:$0xff] %v1366_v22  ;;  %v1370_v24 = vld [vmem:[%s7774_s0 + $0x1180] sm:$0xff]  ;;  %v1372_v25 = vld [vmem:[%s7774_s0 + $0x1190] sm:$0xff]  ;;  %1369 = vst [vmem:[%s7775_s1 + $0x1170] sm:$0xff] %v1368_v23 }
  0x8e   :  { %1371 = vst [vmem:[%s7775_s1 + $0x1180] sm:$0xff] %v1370_v24  ;;  %1373 = vst [vmem:[%s7775_s1 + $0x1190] sm:$0xff] %v1372_v25  ;;  %v1374_v26 = vld [vmem:[%s7774_s0 + $0x11a0] sm:$0xff]  ;;  %v1376_v27 = vld [vmem:[%s7774_s0 + $0x11b0] sm:$0xff] }
  0x8f   :  { %v1378_v28 = vld [vmem:[%s7774_s0 + $0x11c0] sm:$0xff]  ;;  %1375 = vst [vmem:[%s7775_s1 + $0x11a0] sm:$0xff] %v1374_v26  ;;  %1377 = vst [vmem:[%s7775_s1 + $0x11b0] sm:$0xff] %v1376_v27  ;;  %v1380_v29 = vld [vmem:[%s7774_s0 + $0x11d0] sm:$0xff] }
  0x90   :  { %1379 = vst [vmem:[%s7775_s1 + $0x11c0] sm:$0xff] %v1378_v28  ;;  %v1382_v30 = vld [vmem:[%s7774_s0 + $0x11e0] sm:$0xff]  ;;  %v1384_v31 = vld [vmem:[%s7774_s0 + $0x11f0] sm:$0xff]  ;;  %1381 = vst [vmem:[%s7775_s1 + $0x11d0] sm:$0xff] %v1380_v29 }
  0x91   :  { %1383 = vst [vmem:[%s7775_s1 + $0x11e0] sm:$0xff] %v1382_v30  ;;  %1385 = vst [vmem:[%s7775_s1 + $0x11f0] sm:$0xff] %v1384_v31  ;;  %v1386_v32 = vld [vmem:[%s7774_s0 + $0x1200] sm:$0xff]  ;;  %v1388_v33 = vld [vmem:[%s7774_s0 + $0x1210] sm:$0xff] }
  0x92   :  { %v1390_v34 = vld [vmem:[%s7774_s0 + $0x1220] sm:$0xff]  ;;  %1387 = vst [vmem:[%s7775_s1 + $0x1200] sm:$0xff] %v1386_v32  ;;  %1389 = vst [vmem:[%s7775_s1 + $0x1210] sm:$0xff] %v1388_v33  ;;  %v1392_v35 = vld [vmem:[%s7774_s0 + $0x1230] sm:$0xff] }
  0x93   :  { %1391 = vst [vmem:[%s7775_s1 + $0x1220] sm:$0xff] %v1390_v34  ;;  %v1394_v36 = vld [vmem:[%s7774_s0 + $0x1240] sm:$0xff]  ;;  %v1396_v37 = vld [vmem:[%s7774_s0 + $0x1250] sm:$0xff]  ;;  %1393 = vst [vmem:[%s7775_s1 + $0x1230] sm:$0xff] %v1392_v35 }
  0x94   :  { %1395 = vst [vmem:[%s7775_s1 + $0x1240] sm:$0xff] %v1394_v36  ;;  %1397 = vst [vmem:[%s7775_s1 + $0x1250] sm:$0xff] %v1396_v37  ;;  %v1398_v38 = vld [vmem:[%s7774_s0 + $0x1260] sm:$0xff]  ;;  %v1400_v39 = vld [vmem:[%s7774_s0 + $0x1270] sm:$0xff] }
  0x95   :  { %v1402_v40 = vld [vmem:[%s7774_s0 + $0x1280] sm:$0xff]  ;;  %1399 = vst [vmem:[%s7775_s1 + $0x1260] sm:$0xff] %v1398_v38  ;;  %1401 = vst [vmem:[%s7775_s1 + $0x1270] sm:$0xff] %v1400_v39  ;;  %v1404_v41 = vld [vmem:[%s7774_s0 + $0x1290] sm:$0xff] }
  0x96   :  { %1403 = vst [vmem:[%s7775_s1 + $0x1280] sm:$0xff] %v1402_v40  ;;  %v1406_v42 = vld [vmem:[%s7774_s0 + $0x12a0] sm:$0xff]  ;;  %v1408_v43 = vld [vmem:[%s7774_s0 + $0x12b0] sm:$0xff]  ;;  %1405 = vst [vmem:[%s7775_s1 + $0x1290] sm:$0xff] %v1404_v41 }
  0x97   :  { %1407 = vst [vmem:[%s7775_s1 + $0x12a0] sm:$0xff] %v1406_v42  ;;  %1409 = vst [vmem:[%s7775_s1 + $0x12b0] sm:$0xff] %v1408_v43  ;;  %v1410_v44 = vld [vmem:[%s7774_s0 + $0x12c0] sm:$0xff]  ;;  %v1412_v45 = vld [vmem:[%s7774_s0 + $0x12d0] sm:$0xff] }
  0x98   :  { %v1414_v46 = vld [vmem:[%s7774_s0 + $0x12e0] sm:$0xff]  ;;  %1411 = vst [vmem:[%s7775_s1 + $0x12c0] sm:$0xff] %v1410_v44  ;;  %1413 = vst [vmem:[%s7775_s1 + $0x12d0] sm:$0xff] %v1412_v45  ;;  %v1416_v47 = vld [vmem:[%s7774_s0 + $0x12f0] sm:$0xff] }
  0x99   :  { %1415 = vst [vmem:[%s7775_s1 + $0x12e0] sm:$0xff] %v1414_v46  ;;  %v1418_v48 = vld [vmem:[%s7774_s0 + $0x1300] sm:$0xff]  ;;  %v1420_v49 = vld [vmem:[%s7774_s0 + $0x1310] sm:$0xff]  ;;  %1417 = vst [vmem:[%s7775_s1 + $0x12f0] sm:$0xff] %v1416_v47 }
  0x9a   :  { %1419 = vst [vmem:[%s7775_s1 + $0x1300] sm:$0xff] %v1418_v48  ;;  %1421 = vst [vmem:[%s7775_s1 + $0x1310] sm:$0xff] %v1420_v49  ;;  %v1422_v50 = vld [vmem:[%s7774_s0 + $0x1320] sm:$0xff]  ;;  %v1424_v51 = vld [vmem:[%s7774_s0 + $0x1330] sm:$0xff] }
  0x9b   :  { %v1426_v52 = vld [vmem:[%s7774_s0 + $0x1340] sm:$0xff]  ;;  %1423 = vst [vmem:[%s7775_s1 + $0x1320] sm:$0xff] %v1422_v50  ;;  %1425 = vst [vmem:[%s7775_s1 + $0x1330] sm:$0xff] %v1424_v51  ;;  %v1428_v53 = vld [vmem:[%s7774_s0 + $0x1350] sm:$0xff] }
  0x9c   :  { %1427 = vst [vmem:[%s7775_s1 + $0x1340] sm:$0xff] %v1426_v52  ;;  %v1430_v54 = vld [vmem:[%s7774_s0 + $0x1360] sm:$0xff]  ;;  %v1432_v55 = vld [vmem:[%s7774_s0 + $0x1370] sm:$0xff]  ;;  %1429 = vst [vmem:[%s7775_s1 + $0x1350] sm:$0xff] %v1428_v53 }
  0x9d   :  { %1431 = vst [vmem:[%s7775_s1 + $0x1360] sm:$0xff] %v1430_v54  ;;  %1433 = vst [vmem:[%s7775_s1 + $0x1370] sm:$0xff] %v1432_v55  ;;  %v1434_v56 = vld [vmem:[%s7774_s0 + $0x1380] sm:$0xff]  ;;  %v1436_v57 = vld [vmem:[%s7774_s0 + $0x1390] sm:$0xff] }
  0x9e   :  { %v1438_v58 = vld [vmem:[%s7774_s0 + $0x13a0] sm:$0xff]  ;;  %1435 = vst [vmem:[%s7775_s1 + $0x1380] sm:$0xff] %v1434_v56  ;;  %1437 = vst [vmem:[%s7775_s1 + $0x1390] sm:$0xff] %v1436_v57  ;;  %v1440_v59 = vld [vmem:[%s7774_s0 + $0x13b0] sm:$0xff] }
  0x9f   :  { %1439 = vst [vmem:[%s7775_s1 + $0x13a0] sm:$0xff] %v1438_v58  ;;  %v1442_v60 = vld [vmem:[%s7774_s0 + $0x13c0] sm:$0xff]  ;;  %v1444_v61 = vld [vmem:[%s7774_s0 + $0x13d0] sm:$0xff]  ;;  %1441 = vst [vmem:[%s7775_s1 + $0x13b0] sm:$0xff] %v1440_v59 }
  0xa0   :  { %1443 = vst [vmem:[%s7775_s1 + $0x13c0] sm:$0xff] %v1442_v60  ;;  %1445 = vst [vmem:[%s7775_s1 + $0x13d0] sm:$0xff] %v1444_v61  ;;  %v1446_v62 = vld [vmem:[%s7774_s0 + $0x13e0] sm:$0xff]  ;;  %v1448_v63 = vld [vmem:[%s7774_s0 + $0x13f0] sm:$0xff] }
  0xa1   :  { %v1450_v0 = vld [vmem:[%s7774_s0 + $0x1400] sm:$0xff]  ;;  %1447 = vst [vmem:[%s7775_s1 + $0x13e0] sm:$0xff] %v1446_v62  ;;  %1449 = vst [vmem:[%s7775_s1 + $0x13f0] sm:$0xff] %v1448_v63  ;;  %v1452_v1 = vld [vmem:[%s7774_s0 + $0x1410] sm:$0xff] }
  0xa2   :  { %1451 = vst [vmem:[%s7775_s1 + $0x1400] sm:$0xff] %v1450_v0  ;;  %v1454_v2 = vld [vmem:[%s7774_s0 + $0x1420] sm:$0xff]  ;;  %v1456_v3 = vld [vmem:[%s7774_s0 + $0x1430] sm:$0xff]  ;;  %1453 = vst [vmem:[%s7775_s1 + $0x1410] sm:$0xff] %v1452_v1 }
  0xa3   :  { %1455 = vst [vmem:[%s7775_s1 + $0x1420] sm:$0xff] %v1454_v2  ;;  %1457 = vst [vmem:[%s7775_s1 + $0x1430] sm:$0xff] %v1456_v3  ;;  %v1458_v4 = vld [vmem:[%s7774_s0 + $0x1440] sm:$0xff]  ;;  %v1460_v5 = vld [vmem:[%s7774_s0 + $0x1450] sm:$0xff] }
  0xa4   :  { %v1462_v6 = vld [vmem:[%s7774_s0 + $0x1460] sm:$0xff]  ;;  %1459 = vst [vmem:[%s7775_s1 + $0x1440] sm:$0xff] %v1458_v4  ;;  %1461 = vst [vmem:[%s7775_s1 + $0x1450] sm:$0xff] %v1460_v5  ;;  %v1464_v7 = vld [vmem:[%s7774_s0 + $0x1470] sm:$0xff] }
  0xa5   :  { %1463 = vst [vmem:[%s7775_s1 + $0x1460] sm:$0xff] %v1462_v6  ;;  %v1466_v8 = vld [vmem:[%s7774_s0 + $0x1480] sm:$0xff]  ;;  %v1468_v9 = vld [vmem:[%s7774_s0 + $0x1490] sm:$0xff]  ;;  %1465 = vst [vmem:[%s7775_s1 + $0x1470] sm:$0xff] %v1464_v7 }
  0xa6   :  { %1467 = vst [vmem:[%s7775_s1 + $0x1480] sm:$0xff] %v1466_v8  ;;  %1469 = vst [vmem:[%s7775_s1 + $0x1490] sm:$0xff] %v1468_v9  ;;  %v1470_v10 = vld [vmem:[%s7774_s0 + $0x14a0] sm:$0xff]  ;;  %v1472_v11 = vld [vmem:[%s7774_s0 + $0x14b0] sm:$0xff] }
  0xa7   :  { %v1474_v12 = vld [vmem:[%s7774_s0 + $0x14c0] sm:$0xff]  ;;  %1471 = vst [vmem:[%s7775_s1 + $0x14a0] sm:$0xff] %v1470_v10  ;;  %1473 = vst [vmem:[%s7775_s1 + $0x14b0] sm:$0xff] %v1472_v11  ;;  %v1476_v13 = vld [vmem:[%s7774_s0 + $0x14d0] sm:$0xff] }
  0xa8   :  { %1475 = vst [vmem:[%s7775_s1 + $0x14c0] sm:$0xff] %v1474_v12  ;;  %v1478_v14 = vld [vmem:[%s7774_s0 + $0x14e0] sm:$0xff]  ;;  %v1480_v15 = vld [vmem:[%s7774_s0 + $0x14f0] sm:$0xff]  ;;  %1477 = vst [vmem:[%s7775_s1 + $0x14d0] sm:$0xff] %v1476_v13 }
  0xa9   :  { %1479 = vst [vmem:[%s7775_s1 + $0x14e0] sm:$0xff] %v1478_v14  ;;  %1481 = vst [vmem:[%s7775_s1 + $0x14f0] sm:$0xff] %v1480_v15  ;;  %v1482_v16 = vld [vmem:[%s7774_s0 + $0x1500] sm:$0xff]  ;;  %v1484_v17 = vld [vmem:[%s7774_s0 + $0x1510] sm:$0xff] }
  0xaa   :  { %v1486_v18 = vld [vmem:[%s7774_s0 + $0x1520] sm:$0xff]  ;;  %1483 = vst [vmem:[%s7775_s1 + $0x1500] sm:$0xff] %v1482_v16  ;;  %1485 = vst [vmem:[%s7775_s1 + $0x1510] sm:$0xff] %v1484_v17  ;;  %v1488_v19 = vld [vmem:[%s7774_s0 + $0x1530] sm:$0xff] }
  0xab   :  { %1487 = vst [vmem:[%s7775_s1 + $0x1520] sm:$0xff] %v1486_v18  ;;  %v1490_v20 = vld [vmem:[%s7774_s0 + $0x1540] sm:$0xff]  ;;  %v1492_v21 = vld [vmem:[%s7774_s0 + $0x1550] sm:$0xff]  ;;  %1489 = vst [vmem:[%s7775_s1 + $0x1530] sm:$0xff] %v1488_v19 }
  0xac   :  { %1491 = vst [vmem:[%s7775_s1 + $0x1540] sm:$0xff] %v1490_v20  ;;  %1493 = vst [vmem:[%s7775_s1 + $0x1550] sm:$0xff] %v1492_v21  ;;  %v1494_v22 = vld [vmem:[%s7774_s0 + $0x1560] sm:$0xff]  ;;  %v1496_v23 = vld [vmem:[%s7774_s0 + $0x1570] sm:$0xff] }
  0xad   :  { %v1498_v24 = vld [vmem:[%s7774_s0 + $0x1580] sm:$0xff]  ;;  %1495 = vst [vmem:[%s7775_s1 + $0x1560] sm:$0xff] %v1494_v22  ;;  %1497 = vst [vmem:[%s7775_s1 + $0x1570] sm:$0xff] %v1496_v23  ;;  %v1500_v25 = vld [vmem:[%s7774_s0 + $0x1590] sm:$0xff] }
  0xae   :  { %1499 = vst [vmem:[%s7775_s1 + $0x1580] sm:$0xff] %v1498_v24  ;;  %v1502_v26 = vld [vmem:[%s7774_s0 + $0x15a0] sm:$0xff]  ;;  %v1504_v27 = vld [vmem:[%s7774_s0 + $0x15b0] sm:$0xff]  ;;  %1501 = vst [vmem:[%s7775_s1 + $0x1590] sm:$0xff] %v1500_v25 }
  0xaf   :  { %1503 = vst [vmem:[%s7775_s1 + $0x15a0] sm:$0xff] %v1502_v26  ;;  %1505 = vst [vmem:[%s7775_s1 + $0x15b0] sm:$0xff] %v1504_v27  ;;  %v1506_v28 = vld [vmem:[%s7774_s0 + $0x15c0] sm:$0xff]  ;;  %v1508_v29 = vld [vmem:[%s7774_s0 + $0x15d0] sm:$0xff] }
  0xb0   :  { %v1510_v30 = vld [vmem:[%s7774_s0 + $0x15e0] sm:$0xff]  ;;  %1507 = vst [vmem:[%s7775_s1 + $0x15c0] sm:$0xff] %v1506_v28  ;;  %1509 = vst [vmem:[%s7775_s1 + $0x15d0] sm:$0xff] %v1508_v29  ;;  %v1512_v31 = vld [vmem:[%s7774_s0 + $0x15f0] sm:$0xff] }
  0xb1   :  { %1511 = vst [vmem:[%s7775_s1 + $0x15e0] sm:$0xff] %v1510_v30  ;;  %v1514_v32 = vld [vmem:[%s7774_s0 + $0x1600] sm:$0xff]  ;;  %v1516_v33 = vld [vmem:[%s7774_s0 + $0x1610] sm:$0xff]  ;;  %1513 = vst [vmem:[%s7775_s1 + $0x15f0] sm:$0xff] %v1512_v31 }
  0xb2   :  { %1515 = vst [vmem:[%s7775_s1 + $0x1600] sm:$0xff] %v1514_v32  ;;  %1517 = vst [vmem:[%s7775_s1 + $0x1610] sm:$0xff] %v1516_v33  ;;  %v1518_v34 = vld [vmem:[%s7774_s0 + $0x1620] sm:$0xff]  ;;  %v1520_v35 = vld [vmem:[%s7774_s0 + $0x1630] sm:$0xff] }
  0xb3   :  { %v1522_v36 = vld [vmem:[%s7774_s0 + $0x1640] sm:$0xff]  ;;  %1519 = vst [vmem:[%s7775_s1 + $0x1620] sm:$0xff] %v1518_v34  ;;  %1521 = vst [vmem:[%s7775_s1 + $0x1630] sm:$0xff] %v1520_v35  ;;  %v1524_v37 = vld [vmem:[%s7774_s0 + $0x1650] sm:$0xff] }
  0xb4   :  { %1523 = vst [vmem:[%s7775_s1 + $0x1640] sm:$0xff] %v1522_v36  ;;  %v1526_v38 = vld [vmem:[%s7774_s0 + $0x1660] sm:$0xff]  ;;  %v1528_v39 = vld [vmem:[%s7774_s0 + $0x1670] sm:$0xff]  ;;  %1525 = vst [vmem:[%s7775_s1 + $0x1650] sm:$0xff] %v1524_v37 }
  0xb5   :  { %1527 = vst [vmem:[%s7775_s1 + $0x1660] sm:$0xff] %v1526_v38  ;;  %1529 = vst [vmem:[%s7775_s1 + $0x1670] sm:$0xff] %v1528_v39  ;;  %v1530_v40 = vld [vmem:[%s7774_s0 + $0x1680] sm:$0xff]  ;;  %v1532_v41 = vld [vmem:[%s7774_s0 + $0x1690] sm:$0xff] }
  0xb6   :  { %v1534_v42 = vld [vmem:[%s7774_s0 + $0x16a0] sm:$0xff]  ;;  %1531 = vst [vmem:[%s7775_s1 + $0x1680] sm:$0xff] %v1530_v40  ;;  %1533 = vst [vmem:[%s7775_s1 + $0x1690] sm:$0xff] %v1532_v41  ;;  %v1536_v43 = vld [vmem:[%s7774_s0 + $0x16b0] sm:$0xff] }
  0xb7   :  { %1535 = vst [vmem:[%s7775_s1 + $0x16a0] sm:$0xff] %v1534_v42  ;;  %v1538_v44 = vld [vmem:[%s7774_s0 + $0x16c0] sm:$0xff]  ;;  %v1540_v45 = vld [vmem:[%s7774_s0 + $0x16d0] sm:$0xff]  ;;  %1537 = vst [vmem:[%s7775_s1 + $0x16b0] sm:$0xff] %v1536_v43 }
  0xb8   :  { %1539 = vst [vmem:[%s7775_s1 + $0x16c0] sm:$0xff] %v1538_v44  ;;  %1541 = vst [vmem:[%s7775_s1 + $0x16d0] sm:$0xff] %v1540_v45  ;;  %v1542_v46 = vld [vmem:[%s7774_s0 + $0x16e0] sm:$0xff]  ;;  %v1544_v47 = vld [vmem:[%s7774_s0 + $0x16f0] sm:$0xff] }
  0xb9   :  { %v1546_v48 = vld [vmem:[%s7774_s0 + $0x1700] sm:$0xff]  ;;  %1543 = vst [vmem:[%s7775_s1 + $0x16e0] sm:$0xff] %v1542_v46  ;;  %1545 = vst [vmem:[%s7775_s1 + $0x16f0] sm:$0xff] %v1544_v47  ;;  %v1548_v49 = vld [vmem:[%s7774_s0 + $0x1710] sm:$0xff] }
  0xba   :  { %1547 = vst [vmem:[%s7775_s1 + $0x1700] sm:$0xff] %v1546_v48  ;;  %v1550_v50 = vld [vmem:[%s7774_s0 + $0x1720] sm:$0xff]  ;;  %v1552_v51 = vld [vmem:[%s7774_s0 + $0x1730] sm:$0xff]  ;;  %1549 = vst [vmem:[%s7775_s1 + $0x1710] sm:$0xff] %v1548_v49 }
  0xbb   :  { %1551 = vst [vmem:[%s7775_s1 + $0x1720] sm:$0xff] %v1550_v50  ;;  %1553 = vst [vmem:[%s7775_s1 + $0x1730] sm:$0xff] %v1552_v51  ;;  %v1554_v52 = vld [vmem:[%s7774_s0 + $0x1740] sm:$0xff]  ;;  %v1556_v53 = vld [vmem:[%s7774_s0 + $0x1750] sm:$0xff] }
  0xbc   :  { %v1558_v54 = vld [vmem:[%s7774_s0 + $0x1760] sm:$0xff]  ;;  %1555 = vst [vmem:[%s7775_s1 + $0x1740] sm:$0xff] %v1554_v52  ;;  %1557 = vst [vmem:[%s7775_s1 + $0x1750] sm:$0xff] %v1556_v53  ;;  %v1560_v55 = vld [vmem:[%s7774_s0 + $0x1770] sm:$0xff] }
  0xbd   :  { %1559 = vst [vmem:[%s7775_s1 + $0x1760] sm:$0xff] %v1558_v54  ;;  %v1562_v56 = vld [vmem:[%s7774_s0 + $0x1780] sm:$0xff]  ;;  %v1564_v57 = vld [vmem:[%s7774_s0 + $0x1790] sm:$0xff]  ;;  %1561 = vst [vmem:[%s7775_s1 + $0x1770] sm:$0xff] %v1560_v55 }
  0xbe   :  { %1563 = vst [vmem:[%s7775_s1 + $0x1780] sm:$0xff] %v1562_v56  ;;  %1565 = vst [vmem:[%s7775_s1 + $0x1790] sm:$0xff] %v1564_v57  ;;  %v1566_v58 = vld [vmem:[%s7774_s0 + $0x17a0] sm:$0xff]  ;;  %v1568_v59 = vld [vmem:[%s7774_s0 + $0x17b0] sm:$0xff] }
  0xbf   :  { %v1570_v60 = vld [vmem:[%s7774_s0 + $0x17c0] sm:$0xff]  ;;  %1567 = vst [vmem:[%s7775_s1 + $0x17a0] sm:$0xff] %v1566_v58  ;;  %1569 = vst [vmem:[%s7775_s1 + $0x17b0] sm:$0xff] %v1568_v59  ;;  %v1572_v61 = vld [vmem:[%s7774_s0 + $0x17d0] sm:$0xff] }
  0xc0   :  { %1571 = vst [vmem:[%s7775_s1 + $0x17c0] sm:$0xff] %v1570_v60  ;;  %v1574_v62 = vld [vmem:[%s7774_s0 + $0x17e0] sm:$0xff]  ;;  %v1576_v63 = vld [vmem:[%s7774_s0 + $0x17f0] sm:$0xff]  ;;  %1573 = vst [vmem:[%s7775_s1 + $0x17d0] sm:$0xff] %v1572_v61 }
  0xc1   :  { %1575 = vst [vmem:[%s7775_s1 + $0x17e0] sm:$0xff] %v1574_v62  ;;  %1577 = vst [vmem:[%s7775_s1 + $0x17f0] sm:$0xff] %v1576_v63  ;;  %v2385_v0 = vld [vmem:[%s7774_s0 + $0x8] sm:$0xf]  ;;  %v2387_v1 = vld [vmem:[%s7774_s0 + $0x18] sm:$0xf] }
  0xc2   :  { %v2389_v2 = vld [vmem:[%s7774_s0 + $0x28] sm:$0xf]  ;;  %2386 = vst [vmem:[%s7775_s1 + $0x8] sm:$0xf] %v2385_v0  ;;  %2388 = vst [vmem:[%s7775_s1 + $0x18] sm:$0xf] %v2387_v1 }
  0xc3   :  { %2390 = vst [vmem:[%s7775_s1 + $0x28] sm:$0xf] %v2389_v2  ;;  %v2391_v3 = vld [vmem:[%s7774_s0 + $0x38] sm:$0xf]  ;;  %v2393_v4 = vld [vmem:[%s7774_s0 + $0x48] sm:$0xf] }
  0xc4   :  { %v2395_v5 = vld [vmem:[%s7774_s0 + $0x58] sm:$0xf]  ;;  %2392 = vst [vmem:[%s7775_s1 + $0x38] sm:$0xf] %v2391_v3  ;;  %2394 = vst [vmem:[%s7775_s1 + $0x48] sm:$0xf] %v2393_v4 }
  0xc5   :  { %2396 = vst [vmem:[%s7775_s1 + $0x58] sm:$0xf] %v2395_v5  ;;  %v2397_v6 = vld [vmem:[%s7774_s0 + $0x68] sm:$0xf]  ;;  %v2399_v7 = vld [vmem:[%s7774_s0 + $0x78] sm:$0xf] }
  0xc6   :  { %v2401_v8 = vld [vmem:[%s7774_s0 + $0x88] sm:$0xf]  ;;  %2398 = vst [vmem:[%s7775_s1 + $0x68] sm:$0xf] %v2397_v6  ;;  %2400 = vst [vmem:[%s7775_s1 + $0x78] sm:$0xf] %v2399_v7 }
  0xc7   :  { %2402 = vst [vmem:[%s7775_s1 + $0x88] sm:$0xf] %v2401_v8  ;;  %v2403_v9 = vld [vmem:[%s7774_s0 + $0x98] sm:$0xf]  ;;  %v2405_v10 = vld [vmem:[%s7774_s0 + $0xa8] sm:$0xf] }
  0xc8   :  { %v2407_v11 = vld [vmem:[%s7774_s0 + $0xb8] sm:$0xf]  ;;  %2404 = vst [vmem:[%s7775_s1 + $0x98] sm:$0xf] %v2403_v9  ;;  %2406 = vst [vmem:[%s7775_s1 + $0xa8] sm:$0xf] %v2405_v10 }
  0xc9   :  { %2408 = vst [vmem:[%s7775_s1 + $0xb8] sm:$0xf] %v2407_v11  ;;  %v2409_v12 = vld [vmem:[%s7774_s0 + $0xc8] sm:$0xf]  ;;  %v2411_v13 = vld [vmem:[%s7774_s0 + $0xd8] sm:$0xf] }
  0xca   :  { %v2413_v14 = vld [vmem:[%s7774_s0 + $0xe8] sm:$0xf]  ;;  %2410 = vst [vmem:[%s7775_s1 + $0xc8] sm:$0xf] %v2409_v12  ;;  %2412 = vst [vmem:[%s7775_s1 + $0xd8] sm:$0xf] %v2411_v13 }
  0xcb   :  { %2414 = vst [vmem:[%s7775_s1 + $0xe8] sm:$0xf] %v2413_v14  ;;  %v2415_v15 = vld [vmem:[%s7774_s0 + $0xf8] sm:$0xf]  ;;  %v2417_v16 = vld [vmem:[%s7774_s0 + $0x108] sm:$0xf] }
  0xcc   :  { %v2419_v17 = vld [vmem:[%s7774_s0 + $0x118] sm:$0xf]  ;;  %2416 = vst [vmem:[%s7775_s1 + $0xf8] sm:$0xf] %v2415_v15  ;;  %2418 = vst [vmem:[%s7775_s1 + $0x108] sm:$0xf] %v2417_v16 }
  0xcd   :  { %2420 = vst [vmem:[%s7775_s1 + $0x118] sm:$0xf] %v2419_v17  ;;  %v2421_v18 = vld [vmem:[%s7774_s0 + $0x128] sm:$0xf]  ;;  %v2423_v19 = vld [vmem:[%s7774_s0 + $0x138] sm:$0xf] }
  0xce   :  { %v2425_v20 = vld [vmem:[%s7774_s0 + $0x148] sm:$0xf]  ;;  %2422 = vst [vmem:[%s7775_s1 + $0x128] sm:$0xf] %v2421_v18  ;;  %2424 = vst [vmem:[%s7775_s1 + $0x138] sm:$0xf] %v2423_v19 }
  0xcf   :  { %2426 = vst [vmem:[%s7775_s1 + $0x148] sm:$0xf] %v2425_v20  ;;  %v2427_v21 = vld [vmem:[%s7774_s0 + $0x158] sm:$0xf]  ;;  %v2429_v22 = vld [vmem:[%s7774_s0 + $0x168] sm:$0xf] }
  0xd0   :  { %v2431_v23 = vld [vmem:[%s7774_s0 + $0x178] sm:$0xf]  ;;  %2428 = vst [vmem:[%s7775_s1 + $0x158] sm:$0xf] %v2427_v21  ;;  %2430 = vst [vmem:[%s7775_s1 + $0x168] sm:$0xf] %v2429_v22 }
  0xd1   :  { %2432 = vst [vmem:[%s7775_s1 + $0x178] sm:$0xf] %v2431_v23  ;;  %v2433_v24 = vld [vmem:[%s7774_s0 + $0x188] sm:$0xf]  ;;  %v2435_v25 = vld [vmem:[%s7774_s0 + $0x198] sm:$0xf] }
  0xd2   :  { %v2437_v26 = vld [vmem:[%s7774_s0 + $0x1a8] sm:$0xf]  ;;  %2434 = vst [vmem:[%s7775_s1 + $0x188] sm:$0xf] %v2433_v24  ;;  %2436 = vst [vmem:[%s7775_s1 + $0x198] sm:$0xf] %v2435_v25 }
  0xd3   :  { %2438 = vst [vmem:[%s7775_s1 + $0x1a8] sm:$0xf] %v2437_v26  ;;  %v2439_v27 = vld [vmem:[%s7774_s0 + $0x1b8] sm:$0xf]  ;;  %v2441_v28 = vld [vmem:[%s7774_s0 + $0x1c8] sm:$0xf] }
  0xd4   :  { %v2443_v29 = vld [vmem:[%s7774_s0 + $0x1d8] sm:$0xf]  ;;  %2440 = vst [vmem:[%s7775_s1 + $0x1b8] sm:$0xf] %v2439_v27  ;;  %2442 = vst [vmem:[%s7775_s1 + $0x1c8] sm:$0xf] %v2441_v28 }
  0xd5   :  { %2444 = vst [vmem:[%s7775_s1 + $0x1d8] sm:$0xf] %v2443_v29  ;;  %v2445_v30 = vld [vmem:[%s7774_s0 + $0x1e8] sm:$0xf]  ;;  %v2447_v31 = vld [vmem:[%s7774_s0 + $0x1f8] sm:$0xf] }
  0xd6   :  { %v2449_v32 = vld [vmem:[%s7774_s0 + $0x208] sm:$0xf]  ;;  %2446 = vst [vmem:[%s7775_s1 + $0x1e8] sm:$0xf] %v2445_v30  ;;  %2448 = vst [vmem:[%s7775_s1 + $0x1f8] sm:$0xf] %v2447_v31 }
  0xd7   :  { %2450 = vst [vmem:[%s7775_s1 + $0x208] sm:$0xf] %v2449_v32  ;;  %v2451_v33 = vld [vmem:[%s7774_s0 + $0x218] sm:$0xf]  ;;  %v2453_v34 = vld [vmem:[%s7774_s0 + $0x228] sm:$0xf] }
  0xd8   :  { %v2455_v35 = vld [vmem:[%s7774_s0 + $0x238] sm:$0xf]  ;;  %2452 = vst [vmem:[%s7775_s1 + $0x218] sm:$0xf] %v2451_v33  ;;  %2454 = vst [vmem:[%s7775_s1 + $0x228] sm:$0xf] %v2453_v34 }
  0xd9   :  { %2456 = vst [vmem:[%s7775_s1 + $0x238] sm:$0xf] %v2455_v35  ;;  %v2457_v36 = vld [vmem:[%s7774_s0 + $0x248] sm:$0xf]  ;;  %v2459_v37 = vld [vmem:[%s7774_s0 + $0x258] sm:$0xf] }
  0xda   :  { %v2461_v38 = vld [vmem:[%s7774_s0 + $0x268] sm:$0xf]  ;;  %2458 = vst [vmem:[%s7775_s1 + $0x248] sm:$0xf] %v2457_v36  ;;  %2460 = vst [vmem:[%s7775_s1 + $0x258] sm:$0xf] %v2459_v37 }
  0xdb   :  { %2462 = vst [vmem:[%s7775_s1 + $0x268] sm:$0xf] %v2461_v38  ;;  %v2463_v39 = vld [vmem:[%s7774_s0 + $0x278] sm:$0xf]  ;;  %v2465_v40 = vld [vmem:[%s7774_s0 + $0x288] sm:$0xf] }
  0xdc   :  { %v2467_v41 = vld [vmem:[%s7774_s0 + $0x298] sm:$0xf]  ;;  %2464 = vst [vmem:[%s7775_s1 + $0x278] sm:$0xf] %v2463_v39  ;;  %2466 = vst [vmem:[%s7775_s1 + $0x288] sm:$0xf] %v2465_v40 }
  0xdd   :  { %2468 = vst [vmem:[%s7775_s1 + $0x298] sm:$0xf] %v2467_v41  ;;  %v2469_v42 = vld [vmem:[%s7774_s0 + $0x2a8] sm:$0xf]  ;;  %v2471_v43 = vld [vmem:[%s7774_s0 + $0x2b8] sm:$0xf] }
  0xde   :  { %v2473_v44 = vld [vmem:[%s7774_s0 + $0x2c8] sm:$0xf]  ;;  %2470 = vst [vmem:[%s7775_s1 + $0x2a8] sm:$0xf] %v2469_v42  ;;  %2472 = vst [vmem:[%s7775_s1 + $0x2b8] sm:$0xf] %v2471_v43 }
  0xdf   :  { %2474 = vst [vmem:[%s7775_s1 + $0x2c8] sm:$0xf] %v2473_v44  ;;  %v2475_v45 = vld [vmem:[%s7774_s0 + $0x2d8] sm:$0xf]  ;;  %v2477_v46 = vld [vmem:[%s7774_s0 + $0x2e8] sm:$0xf] }
  0xe0   :  { %v2479_v47 = vld [vmem:[%s7774_s0 + $0x2f8] sm:$0xf]  ;;  %2476 = vst [vmem:[%s7775_s1 + $0x2d8] sm:$0xf] %v2475_v45  ;;  %2478 = vst [vmem:[%s7775_s1 + $0x2e8] sm:$0xf] %v2477_v46 }
  0xe1   :  { %2480 = vst [vmem:[%s7775_s1 + $0x2f8] sm:$0xf] %v2479_v47  ;;  %v2481_v48 = vld [vmem:[%s7774_s0 + $0x308] sm:$0xf]  ;;  %v2483_v49 = vld [vmem:[%s7774_s0 + $0x318] sm:$0xf] }
  0xe2   :  { %v2485_v50 = vld [vmem:[%s7774_s0 + $0x328] sm:$0xf]  ;;  %2482 = vst [vmem:[%s7775_s1 + $0x308] sm:$0xf] %v2481_v48  ;;  %2484 = vst [vmem:[%s7775_s1 + $0x318] sm:$0xf] %v2483_v49 }
  0xe3   :  { %2486 = vst [vmem:[%s7775_s1 + $0x328] sm:$0xf] %v2485_v50  ;;  %v2487_v51 = vld [vmem:[%s7774_s0 + $0x338] sm:$0xf]  ;;  %v2489_v52 = vld [vmem:[%s7774_s0 + $0x348] sm:$0xf] }
  0xe4   :  { %v2491_v53 = vld [vmem:[%s7774_s0 + $0x358] sm:$0xf]  ;;  %2488 = vst [vmem:[%s7775_s1 + $0x338] sm:$0xf] %v2487_v51  ;;  %2490 = vst [vmem:[%s7775_s1 + $0x348] sm:$0xf] %v2489_v52 }
  0xe5   :  { %2492 = vst [vmem:[%s7775_s1 + $0x358] sm:$0xf] %v2491_v53  ;;  %v2493_v54 = vld [vmem:[%s7774_s0 + $0x368] sm:$0xf]  ;;  %v2495_v55 = vld [vmem:[%s7774_s0 + $0x378] sm:$0xf] }
  0xe6   :  { %v2497_v56 = vld [vmem:[%s7774_s0 + $0x388] sm:$0xf]  ;;  %2494 = vst [vmem:[%s7775_s1 + $0x368] sm:$0xf] %v2493_v54  ;;  %2496 = vst [vmem:[%s7775_s1 + $0x378] sm:$0xf] %v2495_v55 }
  0xe7   :  { %2498 = vst [vmem:[%s7775_s1 + $0x388] sm:$0xf] %v2497_v56  ;;  %v2499_v57 = vld [vmem:[%s7774_s0 + $0x398] sm:$0xf]  ;;  %v2501_v58 = vld [vmem:[%s7774_s0 + $0x3a8] sm:$0xf] }
  0xe8   :  { %v2503_v59 = vld [vmem:[%s7774_s0 + $0x3b8] sm:$0xf]  ;;  %2500 = vst [vmem:[%s7775_s1 + $0x398] sm:$0xf] %v2499_v57  ;;  %2502 = vst [vmem:[%s7775_s1 + $0x3a8] sm:$0xf] %v2501_v58 }
  0xe9   :  { %2504 = vst [vmem:[%s7775_s1 + $0x3b8] sm:$0xf] %v2503_v59  ;;  %v2505_v60 = vld [vmem:[%s7774_s0 + $0x3c8] sm:$0xf]  ;;  %v2507_v61 = vld [vmem:[%s7774_s0 + $0x3d8] sm:$0xf] }
  0xea   :  { %v2509_v62 = vld [vmem:[%s7774_s0 + $0x3e8] sm:$0xf]  ;;  %2506 = vst [vmem:[%s7775_s1 + $0x3c8] sm:$0xf] %v2505_v60  ;;  %2508 = vst [vmem:[%s7775_s1 + $0x3d8] sm:$0xf] %v2507_v61 }
  0xeb   :  { %2510 = vst [vmem:[%s7775_s1 + $0x3e8] sm:$0xf] %v2509_v62  ;;  %v2511_v63 = vld [vmem:[%s7774_s0 + $0x3f8] sm:$0xf]  ;;  %v2513_v0 = vld [vmem:[%s7774_s0 + $0x408] sm:$0xf] }
  0xec   :  { %v2515_v1 = vld [vmem:[%s7774_s0 + $0x418] sm:$0xf]  ;;  %2512 = vst [vmem:[%s7775_s1 + $0x3f8] sm:$0xf] %v2511_v63  ;;  %2514 = vst [vmem:[%s7775_s1 + $0x408] sm:$0xf] %v2513_v0 }
  0xed   :  { %2516 = vst [vmem:[%s7775_s1 + $0x418] sm:$0xf] %v2515_v1  ;;  %v2517_v2 = vld [vmem:[%s7774_s0 + $0x428] sm:$0xf]  ;;  %v2519_v3 = vld [vmem:[%s7774_s0 + $0x438] sm:$0xf] }
  0xee   :  { %v2521_v4 = vld [vmem:[%s7774_s0 + $0x448] sm:$0xf]  ;;  %2518 = vst [vmem:[%s7775_s1 + $0x428] sm:$0xf] %v2517_v2  ;;  %2520 = vst [vmem:[%s7775_s1 + $0x438] sm:$0xf] %v2519_v3 }
  0xef   :  { %2522 = vst [vmem:[%s7775_s1 + $0x448] sm:$0xf] %v2521_v4  ;;  %v2523_v5 = vld [vmem:[%s7774_s0 + $0x458] sm:$0xf]  ;;  %v2525_v6 = vld [vmem:[%s7774_s0 + $0x468] sm:$0xf] }
  0xf0   :  { %v2527_v7 = vld [vmem:[%s7774_s0 + $0x478] sm:$0xf]  ;;  %2524 = vst [vmem:[%s7775_s1 + $0x458] sm:$0xf] %v2523_v5  ;;  %2526 = vst [vmem:[%s7775_s1 + $0x468] sm:$0xf] %v2525_v6 }
  0xf1   :  { %2528 = vst [vmem:[%s7775_s1 + $0x478] sm:$0xf] %v2527_v7  ;;  %v2529_v8 = vld [vmem:[%s7774_s0 + $0x488] sm:$0xf]  ;;  %v2531_v9 = vld [vmem:[%s7774_s0 + $0x498] sm:$0xf] }
  0xf2   :  { %v2533_v10 = vld [vmem:[%s7774_s0 + $0x4a8] sm:$0xf]  ;;  %2530 = vst [vmem:[%s7775_s1 + $0x488] sm:$0xf] %v2529_v8  ;;  %2532 = vst [vmem:[%s7775_s1 + $0x498] sm:$0xf] %v2531_v9 }
  0xf3   :  { %2534 = vst [vmem:[%s7775_s1 + $0x4a8] sm:$0xf] %v2533_v10  ;;  %v2535_v11 = vld [vmem:[%s7774_s0 + $0x4b8] sm:$0xf]  ;;  %v2537_v12 = vld [vmem:[%s7774_s0 + $0x4c8] sm:$0xf] }
  0xf4   :  { %v2539_v13 = vld [vmem:[%s7774_s0 + $0x4d8] sm:$0xf]  ;;  %2536 = vst [vmem:[%s7775_s1 + $0x4b8] sm:$0xf] %v2535_v11  ;;  %2538 = vst [vmem:[%s7775_s1 + $0x4c8] sm:$0xf] %v2537_v12 }
  0xf5   :  { %2540 = vst [vmem:[%s7775_s1 + $0x4d8] sm:$0xf] %v2539_v13  ;;  %v2541_v14 = vld [vmem:[%s7774_s0 + $0x4e8] sm:$0xf]  ;;  %v2543_v15 = vld [vmem:[%s7774_s0 + $0x4f8] sm:$0xf] }
  0xf6   :  { %v2545_v16 = vld [vmem:[%s7774_s0 + $0x508] sm:$0xf]  ;;  %2542 = vst [vmem:[%s7775_s1 + $0x4e8] sm:$0xf] %v2541_v14  ;;  %2544 = vst [vmem:[%s7775_s1 + $0x4f8] sm:$0xf] %v2543_v15 }
  0xf7   :  { %2546 = vst [vmem:[%s7775_s1 + $0x508] sm:$0xf] %v2545_v16  ;;  %v2547_v17 = vld [vmem:[%s7774_s0 + $0x518] sm:$0xf]  ;;  %v2549_v18 = vld [vmem:[%s7774_s0 + $0x528] sm:$0xf] }
  0xf8   :  { %v2551_v19 = vld [vmem:[%s7774_s0 + $0x538] sm:$0xf]  ;;  %2548 = vst [vmem:[%s7775_s1 + $0x518] sm:$0xf] %v2547_v17  ;;  %2550 = vst [vmem:[%s7775_s1 + $0x528] sm:$0xf] %v2549_v18 }
  0xf9   :  { %2552 = vst [vmem:[%s7775_s1 + $0x538] sm:$0xf] %v2551_v19  ;;  %v2553_v20 = vld [vmem:[%s7774_s0 + $0x548] sm:$0xf]  ;;  %v2555_v21 = vld [vmem:[%s7774_s0 + $0x558] sm:$0xf] }
  0xfa   :  { %v2557_v22 = vld [vmem:[%s7774_s0 + $0x568] sm:$0xf]  ;;  %2554 = vst [vmem:[%s7775_s1 + $0x548] sm:$0xf] %v2553_v20  ;;  %2556 = vst [vmem:[%s7775_s1 + $0x558] sm:$0xf] %v2555_v21 }
  0xfb   :  { %2558 = vst [vmem:[%s7775_s1 + $0x568] sm:$0xf] %v2557_v22  ;;  %v2559_v23 = vld [vmem:[%s7774_s0 + $0x578] sm:$0xf]  ;;  %v2561_v24 = vld [vmem:[%s7774_s0 + $0x588] sm:$0xf] }
  0xfc   :  { %v2563_v25 = vld [vmem:[%s7774_s0 + $0x598] sm:$0xf]  ;;  %2560 = vst [vmem:[%s7775_s1 + $0x578] sm:$0xf] %v2559_v23  ;;  %2562 = vst [vmem:[%s7775_s1 + $0x588] sm:$0xf] %v2561_v24 }
  0xfd   :  { %2564 = vst [vmem:[%s7775_s1 + $0x598] sm:$0xf] %v2563_v25  ;;  %v2565_v26 = vld [vmem:[%s7774_s0 + $0x5a8] sm:$0xf]  ;;  %v2567_v27 = vld [vmem:[%s7774_s0 + $0x5b8] sm:$0xf] }
  0xfe   :  { %v2569_v28 = vld [vmem:[%s7774_s0 + $0x5c8] sm:$0xf]  ;;  %2566 = vst [vmem:[%s7775_s1 + $0x5a8] sm:$0xf] %v2565_v26  ;;  %2568 = vst [vmem:[%s7775_s1 + $0x5b8] sm:$0xf] %v2567_v27 }
  0xff   :  { %2570 = vst [vmem:[%s7775_s1 + $0x5c8] sm:$0xf] %v2569_v28  ;;  %v2571_v29 = vld [vmem:[%s7774_s0 + $0x5d8] sm:$0xf]  ;;  %v2573_v30 = vld [vmem:[%s7774_s0 + $0x5e8] sm:$0xf] }
 0x100   :  { %v2575_v31 = vld [vmem:[%s7774_s0 + $0x5f8] sm:$0xf]  ;;  %2572 = vst [vmem:[%s7775_s1 + $0x5d8] sm:$0xf] %v2571_v29  ;;  %2574 = vst [vmem:[%s7775_s1 + $0x5e8] sm:$0xf] %v2573_v30 }
 0x101   :  { %2576 = vst [vmem:[%s7775_s1 + $0x5f8] sm:$0xf] %v2575_v31  ;;  %v2577_v32 = vld [vmem:[%s7774_s0 + $0x608] sm:$0xf]  ;;  %v2579_v33 = vld [vmem:[%s7774_s0 + $0x618] sm:$0xf] }
 0x102   :  { %v2581_v34 = vld [vmem:[%s7774_s0 + $0x628] sm:$0xf]  ;;  %2578 = vst [vmem:[%s7775_s1 + $0x608] sm:$0xf] %v2577_v32  ;;  %2580 = vst [vmem:[%s7775_s1 + $0x618] sm:$0xf] %v2579_v33 }
 0x103   :  { %2582 = vst [vmem:[%s7775_s1 + $0x628] sm:$0xf] %v2581_v34  ;;  %v2583_v35 = vld [vmem:[%s7774_s0 + $0x638] sm:$0xf]  ;;  %v2585_v36 = vld [vmem:[%s7774_s0 + $0x648] sm:$0xf] }
 0x104   :  { %v2587_v37 = vld [vmem:[%s7774_s0 + $0x658] sm:$0xf]  ;;  %2584 = vst [vmem:[%s7775_s1 + $0x638] sm:$0xf] %v2583_v35  ;;  %2586 = vst [vmem:[%s7775_s1 + $0x648] sm:$0xf] %v2585_v36 }
 0x105   :  { %2588 = vst [vmem:[%s7775_s1 + $0x658] sm:$0xf] %v2587_v37  ;;  %v2589_v38 = vld [vmem:[%s7774_s0 + $0x668] sm:$0xf]  ;;  %v2591_v39 = vld [vmem:[%s7774_s0 + $0x678] sm:$0xf] }
 0x106   :  { %v2593_v40 = vld [vmem:[%s7774_s0 + $0x688] sm:$0xf]  ;;  %2590 = vst [vmem:[%s7775_s1 + $0x668] sm:$0xf] %v2589_v38  ;;  %2592 = vst [vmem:[%s7775_s1 + $0x678] sm:$0xf] %v2591_v39 }
 0x107   :  { %2594 = vst [vmem:[%s7775_s1 + $0x688] sm:$0xf] %v2593_v40  ;;  %v2595_v41 = vld [vmem:[%s7774_s0 + $0x698] sm:$0xf]  ;;  %v2597_v42 = vld [vmem:[%s7774_s0 + $0x6a8] sm:$0xf] }
 0x108   :  { %v2599_v43 = vld [vmem:[%s7774_s0 + $0x6b8] sm:$0xf]  ;;  %2596 = vst [vmem:[%s7775_s1 + $0x698] sm:$0xf] %v2595_v41  ;;  %2598 = vst [vmem:[%s7775_s1 + $0x6a8] sm:$0xf] %v2597_v42 }
 0x109   :  { %2600 = vst [vmem:[%s7775_s1 + $0x6b8] sm:$0xf] %v2599_v43  ;;  %v2601_v44 = vld [vmem:[%s7774_s0 + $0x6c8] sm:$0xf]  ;;  %v2603_v45 = vld [vmem:[%s7774_s0 + $0x6d8] sm:$0xf] }
 0x10a   :  { %v2605_v46 = vld [vmem:[%s7774_s0 + $0x6e8] sm:$0xf]  ;;  %2602 = vst [vmem:[%s7775_s1 + $0x6c8] sm:$0xf] %v2601_v44  ;;  %2604 = vst [vmem:[%s7775_s1 + $0x6d8] sm:$0xf] %v2603_v45 }
 0x10b   :  { %2606 = vst [vmem:[%s7775_s1 + $0x6e8] sm:$0xf] %v2605_v46  ;;  %v2607_v47 = vld [vmem:[%s7774_s0 + $0x6f8] sm:$0xf]  ;;  %v2609_v48 = vld [vmem:[%s7774_s0 + $0x708] sm:$0xf] }
 0x10c   :  { %v2611_v49 = vld [vmem:[%s7774_s0 + $0x718] sm:$0xf]  ;;  %2608 = vst [vmem:[%s7775_s1 + $0x6f8] sm:$0xf] %v2607_v47  ;;  %2610 = vst [vmem:[%s7775_s1 + $0x708] sm:$0xf] %v2609_v48 }
 0x10d   :  { %2612 = vst [vmem:[%s7775_s1 + $0x718] sm:$0xf] %v2611_v49  ;;  %v2613_v50 = vld [vmem:[%s7774_s0 + $0x728] sm:$0xf]  ;;  %v2615_v51 = vld [vmem:[%s7774_s0 + $0x738] sm:$0xf] }
 0x10e   :  { %v2617_v52 = vld [vmem:[%s7774_s0 + $0x748] sm:$0xf]  ;;  %2614 = vst [vmem:[%s7775_s1 + $0x728] sm:$0xf] %v2613_v50  ;;  %2616 = vst [vmem:[%s7775_s1 + $0x738] sm:$0xf] %v2615_v51 }
 0x10f   :  { %2618 = vst [vmem:[%s7775_s1 + $0x748] sm:$0xf] %v2617_v52  ;;  %v2619_v53 = vld [vmem:[%s7774_s0 + $0x758] sm:$0xf]  ;;  %v2621_v54 = vld [vmem:[%s7774_s0 + $0x768] sm:$0xf] }
 0x110   :  { %v2623_v55 = vld [vmem:[%s7774_s0 + $0x778] sm:$0xf]  ;;  %2620 = vst [vmem:[%s7775_s1 + $0x758] sm:$0xf] %v2619_v53  ;;  %2622 = vst [vmem:[%s7775_s1 + $0x768] sm:$0xf] %v2621_v54 }
 0x111   :  { %2624 = vst [vmem:[%s7775_s1 + $0x778] sm:$0xf] %v2623_v55  ;;  %v2625_v56 = vld [vmem:[%s7774_s0 + $0x788] sm:$0xf]  ;;  %v2627_v57 = vld [vmem:[%s7774_s0 + $0x798] sm:$0xf] }
 0x112   :  { %v2629_v58 = vld [vmem:[%s7774_s0 + $0x7a8] sm:$0xf]  ;;  %2626 = vst [vmem:[%s7775_s1 + $0x788] sm:$0xf] %v2625_v56  ;;  %2628 = vst [vmem:[%s7775_s1 + $0x798] sm:$0xf] %v2627_v57 }
 0x113   :  { %2630 = vst [vmem:[%s7775_s1 + $0x7a8] sm:$0xf] %v2629_v58  ;;  %v2631_v59 = vld [vmem:[%s7774_s0 + $0x7b8] sm:$0xf]  ;;  %v2633_v60 = vld [vmem:[%s7774_s0 + $0x7c8] sm:$0xf] }
 0x114   :  { %v2635_v61 = vld [vmem:[%s7774_s0 + $0x7d8] sm:$0xf]  ;;  %2632 = vst [vmem:[%s7775_s1 + $0x7b8] sm:$0xf] %v2631_v59  ;;  %2634 = vst [vmem:[%s7775_s1 + $0x7c8] sm:$0xf] %v2633_v60 }
 0x115   :  { %2636 = vst [vmem:[%s7775_s1 + $0x7d8] sm:$0xf] %v2635_v61  ;;  %v2637_v62 = vld [vmem:[%s7774_s0 + $0x7e8] sm:$0xf]  ;;  %v2639_v63 = vld [vmem:[%s7774_s0 + $0x7f8] sm:$0xf] }
 0x116   :  { %v2641_v0 = vld [vmem:[%s7774_s0 + $0x808] sm:$0xf]  ;;  %2638 = vst [vmem:[%s7775_s1 + $0x7e8] sm:$0xf] %v2637_v62  ;;  %2640 = vst [vmem:[%s7775_s1 + $0x7f8] sm:$0xf] %v2639_v63 }
 0x117   :  { %2642 = vst [vmem:[%s7775_s1 + $0x808] sm:$0xf] %v2641_v0  ;;  %v2643_v1 = vld [vmem:[%s7774_s0 + $0x818] sm:$0xf]  ;;  %v2645_v2 = vld [vmem:[%s7774_s0 + $0x828] sm:$0xf] }
 0x118   :  { %v2647_v3 = vld [vmem:[%s7774_s0 + $0x838] sm:$0xf]  ;;  %2644 = vst [vmem:[%s7775_s1 + $0x818] sm:$0xf] %v2643_v1  ;;  %2646 = vst [vmem:[%s7775_s1 + $0x828] sm:$0xf] %v2645_v2 }
 0x119   :  { %2648 = vst [vmem:[%s7775_s1 + $0x838] sm:$0xf] %v2647_v3  ;;  %v2649_v4 = vld [vmem:[%s7774_s0 + $0x848] sm:$0xf]  ;;  %v2651_v5 = vld [vmem:[%s7774_s0 + $0x858] sm:$0xf] }
 0x11a   :  { %v2653_v6 = vld [vmem:[%s7774_s0 + $0x868] sm:$0xf]  ;;  %2650 = vst [vmem:[%s7775_s1 + $0x848] sm:$0xf] %v2649_v4  ;;  %2652 = vst [vmem:[%s7775_s1 + $0x858] sm:$0xf] %v2651_v5 }
 0x11b   :  { %2654 = vst [vmem:[%s7775_s1 + $0x868] sm:$0xf] %v2653_v6  ;;  %v2655_v7 = vld [vmem:[%s7774_s0 + $0x878] sm:$0xf]  ;;  %v2657_v8 = vld [vmem:[%s7774_s0 + $0x888] sm:$0xf] }
 0x11c   :  { %v2659_v9 = vld [vmem:[%s7774_s0 + $0x898] sm:$0xf]  ;;  %2656 = vst [vmem:[%s7775_s1 + $0x878] sm:$0xf] %v2655_v7  ;;  %2658 = vst [vmem:[%s7775_s1 + $0x888] sm:$0xf] %v2657_v8 }
 0x11d   :  { %2660 = vst [vmem:[%s7775_s1 + $0x898] sm:$0xf] %v2659_v9  ;;  %v2661_v10 = vld [vmem:[%s7774_s0 + $0x8a8] sm:$0xf]  ;;  %v2663_v11 = vld [vmem:[%s7774_s0 + $0x8b8] sm:$0xf] }
 0x11e   :  { %v2665_v12 = vld [vmem:[%s7774_s0 + $0x8c8] sm:$0xf]  ;;  %2662 = vst [vmem:[%s7775_s1 + $0x8a8] sm:$0xf] %v2661_v10  ;;  %2664 = vst [vmem:[%s7775_s1 + $0x8b8] sm:$0xf] %v2663_v11 }
 0x11f   :  { %2666 = vst [vmem:[%s7775_s1 + $0x8c8] sm:$0xf] %v2665_v12  ;;  %v2667_v13 = vld [vmem:[%s7774_s0 + $0x8d8] sm:$0xf]  ;;  %v2669_v14 = vld [vmem:[%s7774_s0 + $0x8e8] sm:$0xf] }
 0x120   :  { %v2671_v15 = vld [vmem:[%s7774_s0 + $0x8f8] sm:$0xf]  ;;  %2668 = vst [vmem:[%s7775_s1 + $0x8d8] sm:$0xf] %v2667_v13  ;;  %2670 = vst [vmem:[%s7775_s1 + $0x8e8] sm:$0xf] %v2669_v14 }
 0x121   :  { %2672 = vst [vmem:[%s7775_s1 + $0x8f8] sm:$0xf] %v2671_v15  ;;  %v2673_v16 = vld [vmem:[%s7774_s0 + $0x908] sm:$0xf]  ;;  %v2675_v17 = vld [vmem:[%s7774_s0 + $0x918] sm:$0xf] }
 0x122   :  { %v2677_v18 = vld [vmem:[%s7774_s0 + $0x928] sm:$0xf]  ;;  %2674 = vst [vmem:[%s7775_s1 + $0x908] sm:$0xf] %v2673_v16  ;;  %2676 = vst [vmem:[%s7775_s1 + $0x918] sm:$0xf] %v2675_v17 }
 0x123   :  { %2678 = vst [vmem:[%s7775_s1 + $0x928] sm:$0xf] %v2677_v18  ;;  %v2679_v19 = vld [vmem:[%s7774_s0 + $0x938] sm:$0xf]  ;;  %v2681_v20 = vld [vmem:[%s7774_s0 + $0x948] sm:$0xf] }
 0x124   :  { %v2683_v21 = vld [vmem:[%s7774_s0 + $0x958] sm:$0xf]  ;;  %2680 = vst [vmem:[%s7775_s1 + $0x938] sm:$0xf] %v2679_v19  ;;  %2682 = vst [vmem:[%s7775_s1 + $0x948] sm:$0xf] %v2681_v20 }
 0x125   :  { %2684 = vst [vmem:[%s7775_s1 + $0x958] sm:$0xf] %v2683_v21  ;;  %v2685_v22 = vld [vmem:[%s7774_s0 + $0x968] sm:$0xf]  ;;  %v2687_v23 = vld [vmem:[%s7774_s0 + $0x978] sm:$0xf] }
 0x126   :  { %v2689_v24 = vld [vmem:[%s7774_s0 + $0x988] sm:$0xf]  ;;  %2686 = vst [vmem:[%s7775_s1 + $0x968] sm:$0xf] %v2685_v22  ;;  %2688 = vst [vmem:[%s7775_s1 + $0x978] sm:$0xf] %v2687_v23 }
 0x127   :  { %2690 = vst [vmem:[%s7775_s1 + $0x988] sm:$0xf] %v2689_v24  ;;  %v2691_v25 = vld [vmem:[%s7774_s0 + $0x998] sm:$0xf]  ;;  %v2693_v26 = vld [vmem:[%s7774_s0 + $0x9a8] sm:$0xf] }
 0x128   :  { %v2695_v27 = vld [vmem:[%s7774_s0 + $0x9b8] sm:$0xf]  ;;  %2692 = vst [vmem:[%s7775_s1 + $0x998] sm:$0xf] %v2691_v25  ;;  %2694 = vst [vmem:[%s7775_s1 + $0x9a8] sm:$0xf] %v2693_v26 }
 0x129   :  { %2696 = vst [vmem:[%s7775_s1 + $0x9b8] sm:$0xf] %v2695_v27  ;;  %v2697_v28 = vld [vmem:[%s7774_s0 + $0x9c8] sm:$0xf]  ;;  %v2699_v29 = vld [vmem:[%s7774_s0 + $0x9d8] sm:$0xf] }
 0x12a   :  { %v2701_v30 = vld [vmem:[%s7774_s0 + $0x9e8] sm:$0xf]  ;;  %2698 = vst [vmem:[%s7775_s1 + $0x9c8] sm:$0xf] %v2697_v28  ;;  %2700 = vst [vmem:[%s7775_s1 + $0x9d8] sm:$0xf] %v2699_v29 }
 0x12b   :  { %2702 = vst [vmem:[%s7775_s1 + $0x9e8] sm:$0xf] %v2701_v30  ;;  %v2703_v31 = vld [vmem:[%s7774_s0 + $0x9f8] sm:$0xf]  ;;  %v2705_v32 = vld [vmem:[%s7774_s0 + $0xa08] sm:$0xf] }
 0x12c   :  { %v2707_v33 = vld [vmem:[%s7774_s0 + $0xa18] sm:$0xf]  ;;  %2704 = vst [vmem:[%s7775_s1 + $0x9f8] sm:$0xf] %v2703_v31  ;;  %2706 = vst [vmem:[%s7775_s1 + $0xa08] sm:$0xf] %v2705_v32 }
 0x12d   :  { %2708 = vst [vmem:[%s7775_s1 + $0xa18] sm:$0xf] %v2707_v33  ;;  %v2709_v34 = vld [vmem:[%s7774_s0 + $0xa28] sm:$0xf]  ;;  %v2711_v35 = vld [vmem:[%s7774_s0 + $0xa38] sm:$0xf] }
 0x12e   :  { %v2713_v36 = vld [vmem:[%s7774_s0 + $0xa48] sm:$0xf]  ;;  %2710 = vst [vmem:[%s7775_s1 + $0xa28] sm:$0xf] %v2709_v34  ;;  %2712 = vst [vmem:[%s7775_s1 + $0xa38] sm:$0xf] %v2711_v35 }
 0x12f   :  { %2714 = vst [vmem:[%s7775_s1 + $0xa48] sm:$0xf] %v2713_v36  ;;  %v2715_v37 = vld [vmem:[%s7774_s0 + $0xa58] sm:$0xf]  ;;  %v2717_v38 = vld [vmem:[%s7774_s0 + $0xa68] sm:$0xf] }
 0x130   :  { %v2719_v39 = vld [vmem:[%s7774_s0 + $0xa78] sm:$0xf]  ;;  %2716 = vst [vmem:[%s7775_s1 + $0xa58] sm:$0xf] %v2715_v37  ;;  %2718 = vst [vmem:[%s7775_s1 + $0xa68] sm:$0xf] %v2717_v38 }
 0x131   :  { %2720 = vst [vmem:[%s7775_s1 + $0xa78] sm:$0xf] %v2719_v39  ;;  %v2721_v40 = vld [vmem:[%s7774_s0 + $0xa88] sm:$0xf]  ;;  %v2723_v41 = vld [vmem:[%s7774_s0 + $0xa98] sm:$0xf] }
 0x132   :  { %v2725_v42 = vld [vmem:[%s7774_s0 + $0xaa8] sm:$0xf]  ;;  %2722 = vst [vmem:[%s7775_s1 + $0xa88] sm:$0xf] %v2721_v40  ;;  %2724 = vst [vmem:[%s7775_s1 + $0xa98] sm:$0xf] %v2723_v41 }
 0x133   :  { %2726 = vst [vmem:[%s7775_s1 + $0xaa8] sm:$0xf] %v2725_v42  ;;  %v2727_v43 = vld [vmem:[%s7774_s0 + $0xab8] sm:$0xf]  ;;  %v2729_v44 = vld [vmem:[%s7774_s0 + $0xac8] sm:$0xf] }
 0x134   :  { %v2731_v45 = vld [vmem:[%s7774_s0 + $0xad8] sm:$0xf]  ;;  %2728 = vst [vmem:[%s7775_s1 + $0xab8] sm:$0xf] %v2727_v43  ;;  %2730 = vst [vmem:[%s7775_s1 + $0xac8] sm:$0xf] %v2729_v44 }
 0x135   :  { %2732 = vst [vmem:[%s7775_s1 + $0xad8] sm:$0xf] %v2731_v45  ;;  %v2733_v46 = vld [vmem:[%s7774_s0 + $0xae8] sm:$0xf]  ;;  %v2735_v47 = vld [vmem:[%s7774_s0 + $0xaf8] sm:$0xf] }
 0x136   :  { %v2737_v48 = vld [vmem:[%s7774_s0 + $0xb08] sm:$0xf]  ;;  %2734 = vst [vmem:[%s7775_s1 + $0xae8] sm:$0xf] %v2733_v46  ;;  %2736 = vst [vmem:[%s7775_s1 + $0xaf8] sm:$0xf] %v2735_v47 }
 0x137   :  { %2738 = vst [vmem:[%s7775_s1 + $0xb08] sm:$0xf] %v2737_v48  ;;  %v2739_v49 = vld [vmem:[%s7774_s0 + $0xb18] sm:$0xf]  ;;  %v2741_v50 = vld [vmem:[%s7774_s0 + $0xb28] sm:$0xf] }
 0x138   :  { %v2743_v51 = vld [vmem:[%s7774_s0 + $0xb38] sm:$0xf]  ;;  %2740 = vst [vmem:[%s7775_s1 + $0xb18] sm:$0xf] %v2739_v49  ;;  %2742 = vst [vmem:[%s7775_s1 + $0xb28] sm:$0xf] %v2741_v50 }
 0x139   :  { %2744 = vst [vmem:[%s7775_s1 + $0xb38] sm:$0xf] %v2743_v51  ;;  %v2745_v52 = vld [vmem:[%s7774_s0 + $0xb48] sm:$0xf]  ;;  %v2747_v53 = vld [vmem:[%s7774_s0 + $0xb58] sm:$0xf] }
 0x13a   :  { %v2749_v54 = vld [vmem:[%s7774_s0 + $0xb68] sm:$0xf]  ;;  %2746 = vst [vmem:[%s7775_s1 + $0xb48] sm:$0xf] %v2745_v52  ;;  %2748 = vst [vmem:[%s7775_s1 + $0xb58] sm:$0xf] %v2747_v53 }
 0x13b   :  { %2750 = vst [vmem:[%s7775_s1 + $0xb68] sm:$0xf] %v2749_v54  ;;  %v2751_v55 = vld [vmem:[%s7774_s0 + $0xb78] sm:$0xf]  ;;  %v2753_v56 = vld [vmem:[%s7774_s0 + $0xb88] sm:$0xf] }
 0x13c   :  { %v2755_v57 = vld [vmem:[%s7774_s0 + $0xb98] sm:$0xf]  ;;  %2752 = vst [vmem:[%s7775_s1 + $0xb78] sm:$0xf] %v2751_v55  ;;  %2754 = vst [vmem:[%s7775_s1 + $0xb88] sm:$0xf] %v2753_v56 }
 0x13d   :  { %2756 = vst [vmem:[%s7775_s1 + $0xb98] sm:$0xf] %v2755_v57  ;;  %v2757_v58 = vld [vmem:[%s7774_s0 + $0xba8] sm:$0xf]  ;;  %v2759_v59 = vld [vmem:[%s7774_s0 + $0xbb8] sm:$0xf] }
 0x13e   :  { %v2761_v60 = vld [vmem:[%s7774_s0 + $0xbc8] sm:$0xf]  ;;  %2758 = vst [vmem:[%s7775_s1 + $0xba8] sm:$0xf] %v2757_v58  ;;  %2760 = vst [vmem:[%s7775_s1 + $0xbb8] sm:$0xf] %v2759_v59 }
 0x13f   :  { %2762 = vst [vmem:[%s7775_s1 + $0xbc8] sm:$0xf] %v2761_v60  ;;  %v2763_v61 = vld [vmem:[%s7774_s0 + $0xbd8] sm:$0xf]  ;;  %v2765_v62 = vld [vmem:[%s7774_s0 + $0xbe8] sm:$0xf] }
 0x140   :  { %v2767_v63 = vld [vmem:[%s7774_s0 + $0xbf8] sm:$0xf]  ;;  %2764 = vst [vmem:[%s7775_s1 + $0xbd8] sm:$0xf] %v2763_v61  ;;  %2766 = vst [vmem:[%s7775_s1 + $0xbe8] sm:$0xf] %v2765_v62 }
 0x141   :  { %2768 = vst [vmem:[%s7775_s1 + $0xbf8] sm:$0xf] %v2767_v63  ;;  %v2769_v0 = vld [vmem:[%s7774_s0 + $0xc08] sm:$0xf]  ;;  %v2771_v1 = vld [vmem:[%s7774_s0 + $0xc18] sm:$0xf] }
 0x142   :  { %v2773_v2 = vld [vmem:[%s7774_s0 + $0xc28] sm:$0xf]  ;;  %2770 = vst [vmem:[%s7775_s1 + $0xc08] sm:$0xf] %v2769_v0  ;;  %2772 = vst [vmem:[%s7775_s1 + $0xc18] sm:$0xf] %v2771_v1 }
 0x143   :  { %2774 = vst [vmem:[%s7775_s1 + $0xc28] sm:$0xf] %v2773_v2  ;;  %v2775_v3 = vld [vmem:[%s7774_s0 + $0xc38] sm:$0xf]  ;;  %v2777_v4 = vld [vmem:[%s7774_s0 + $0xc48] sm:$0xf] }
 0x144   :  { %v2779_v5 = vld [vmem:[%s7774_s0 + $0xc58] sm:$0xf]  ;;  %2776 = vst [vmem:[%s7775_s1 + $0xc38] sm:$0xf] %v2775_v3  ;;  %2778 = vst [vmem:[%s7775_s1 + $0xc48] sm:$0xf] %v2777_v4 }
 0x145   :  { %2780 = vst [vmem:[%s7775_s1 + $0xc58] sm:$0xf] %v2779_v5  ;;  %v2781_v6 = vld [vmem:[%s7774_s0 + $0xc68] sm:$0xf]  ;;  %v2783_v7 = vld [vmem:[%s7774_s0 + $0xc78] sm:$0xf] }
 0x146   :  { %v2785_v8 = vld [vmem:[%s7774_s0 + $0xc88] sm:$0xf]  ;;  %2782 = vst [vmem:[%s7775_s1 + $0xc68] sm:$0xf] %v2781_v6  ;;  %2784 = vst [vmem:[%s7775_s1 + $0xc78] sm:$0xf] %v2783_v7 }
 0x147   :  { %2786 = vst [vmem:[%s7775_s1 + $0xc88] sm:$0xf] %v2785_v8  ;;  %v2787_v9 = vld [vmem:[%s7774_s0 + $0xc98] sm:$0xf]  ;;  %v2789_v10 = vld [vmem:[%s7774_s0 + $0xca8] sm:$0xf] }
 0x148   :  { %v2791_v11 = vld [vmem:[%s7774_s0 + $0xcb8] sm:$0xf]  ;;  %2788 = vst [vmem:[%s7775_s1 + $0xc98] sm:$0xf] %v2787_v9  ;;  %2790 = vst [vmem:[%s7775_s1 + $0xca8] sm:$0xf] %v2789_v10 }
 0x149   :  { %2792 = vst [vmem:[%s7775_s1 + $0xcb8] sm:$0xf] %v2791_v11  ;;  %v2793_v12 = vld [vmem:[%s7774_s0 + $0xcc8] sm:$0xf]  ;;  %v2795_v13 = vld [vmem:[%s7774_s0 + $0xcd8] sm:$0xf] }
 0x14a   :  { %v2797_v14 = vld [vmem:[%s7774_s0 + $0xce8] sm:$0xf]  ;;  %2794 = vst [vmem:[%s7775_s1 + $0xcc8] sm:$0xf] %v2793_v12  ;;  %2796 = vst [vmem:[%s7775_s1 + $0xcd8] sm:$0xf] %v2795_v13 }
 0x14b   :  { %2798 = vst [vmem:[%s7775_s1 + $0xce8] sm:$0xf] %v2797_v14  ;;  %v2799_v15 = vld [vmem:[%s7774_s0 + $0xcf8] sm:$0xf]  ;;  %v2801_v16 = vld [vmem:[%s7774_s0 + $0xd08] sm:$0xf] }
 0x14c   :  { %v2803_v17 = vld [vmem:[%s7774_s0 + $0xd18] sm:$0xf]  ;;  %2800 = vst [vmem:[%s7775_s1 + $0xcf8] sm:$0xf] %v2799_v15  ;;  %2802 = vst [vmem:[%s7775_s1 + $0xd08] sm:$0xf] %v2801_v16 }
 0x14d   :  { %2804 = vst [vmem:[%s7775_s1 + $0xd18] sm:$0xf] %v2803_v17  ;;  %v2805_v18 = vld [vmem:[%s7774_s0 + $0xd28] sm:$0xf]  ;;  %v2807_v19 = vld [vmem:[%s7774_s0 + $0xd38] sm:$0xf] }
 0x14e   :  { %v2809_v20 = vld [vmem:[%s7774_s0 + $0xd48] sm:$0xf]  ;;  %2806 = vst [vmem:[%s7775_s1 + $0xd28] sm:$0xf] %v2805_v18  ;;  %2808 = vst [vmem:[%s7775_s1 + $0xd38] sm:$0xf] %v2807_v19 }
 0x14f   :  { %2810 = vst [vmem:[%s7775_s1 + $0xd48] sm:$0xf] %v2809_v20  ;;  %v2811_v21 = vld [vmem:[%s7774_s0 + $0xd58] sm:$0xf]  ;;  %v2813_v22 = vld [vmem:[%s7774_s0 + $0xd68] sm:$0xf] }
 0x150   :  { %v2815_v23 = vld [vmem:[%s7774_s0 + $0xd78] sm:$0xf]  ;;  %2812 = vst [vmem:[%s7775_s1 + $0xd58] sm:$0xf] %v2811_v21  ;;  %2814 = vst [vmem:[%s7775_s1 + $0xd68] sm:$0xf] %v2813_v22 }
 0x151   :  { %2816 = vst [vmem:[%s7775_s1 + $0xd78] sm:$0xf] %v2815_v23  ;;  %v2817_v24 = vld [vmem:[%s7774_s0 + $0xd88] sm:$0xf]  ;;  %v2819_v25 = vld [vmem:[%s7774_s0 + $0xd98] sm:$0xf] }
 0x152   :  { %v2821_v26 = vld [vmem:[%s7774_s0 + $0xda8] sm:$0xf]  ;;  %2818 = vst [vmem:[%s7775_s1 + $0xd88] sm:$0xf] %v2817_v24  ;;  %2820 = vst [vmem:[%s7775_s1 + $0xd98] sm:$0xf] %v2819_v25 }
 0x153   :  { %2822 = vst [vmem:[%s7775_s1 + $0xda8] sm:$0xf] %v2821_v26  ;;  %v2823_v27 = vld [vmem:[%s7774_s0 + $0xdb8] sm:$0xf]  ;;  %v2825_v28 = vld [vmem:[%s7774_s0 + $0xdc8] sm:$0xf] }
 0x154   :  { %v2827_v29 = vld [vmem:[%s7774_s0 + $0xdd8] sm:$0xf]  ;;  %2824 = vst [vmem:[%s7775_s1 + $0xdb8] sm:$0xf] %v2823_v27  ;;  %2826 = vst [vmem:[%s7775_s1 + $0xdc8] sm:$0xf] %v2825_v28 }
 0x155   :  { %2828 = vst [vmem:[%s7775_s1 + $0xdd8] sm:$0xf] %v2827_v29  ;;  %v2829_v30 = vld [vmem:[%s7774_s0 + $0xde8] sm:$0xf]  ;;  %v2831_v31 = vld [vmem:[%s7774_s0 + $0xdf8] sm:$0xf] }
 0x156   :  { %v2833_v32 = vld [vmem:[%s7774_s0 + $0xe08] sm:$0xf]  ;;  %2830 = vst [vmem:[%s7775_s1 + $0xde8] sm:$0xf] %v2829_v30  ;;  %2832 = vst [vmem:[%s7775_s1 + $0xdf8] sm:$0xf] %v2831_v31 }
 0x157   :  { %2834 = vst [vmem:[%s7775_s1 + $0xe08] sm:$0xf] %v2833_v32  ;;  %v2835_v33 = vld [vmem:[%s7774_s0 + $0xe18] sm:$0xf]  ;;  %v2837_v34 = vld [vmem:[%s7774_s0 + $0xe28] sm:$0xf] }
 0x158   :  { %v2839_v35 = vld [vmem:[%s7774_s0 + $0xe38] sm:$0xf]  ;;  %2836 = vst [vmem:[%s7775_s1 + $0xe18] sm:$0xf] %v2835_v33  ;;  %2838 = vst [vmem:[%s7775_s1 + $0xe28] sm:$0xf] %v2837_v34 }
 0x159   :  { %2840 = vst [vmem:[%s7775_s1 + $0xe38] sm:$0xf] %v2839_v35  ;;  %v2841_v36 = vld [vmem:[%s7774_s0 + $0xe48] sm:$0xf]  ;;  %v2843_v37 = vld [vmem:[%s7774_s0 + $0xe58] sm:$0xf] }
 0x15a   :  { %v2845_v38 = vld [vmem:[%s7774_s0 + $0xe68] sm:$0xf]  ;;  %2842 = vst [vmem:[%s7775_s1 + $0xe48] sm:$0xf] %v2841_v36  ;;  %2844 = vst [vmem:[%s7775_s1 + $0xe58] sm:$0xf] %v2843_v37 }
 0x15b   :  { %2846 = vst [vmem:[%s7775_s1 + $0xe68] sm:$0xf] %v2845_v38  ;;  %v2847_v39 = vld [vmem:[%s7774_s0 + $0xe78] sm:$0xf]  ;;  %v2849_v40 = vld [vmem:[%s7774_s0 + $0xe88] sm:$0xf] }
 0x15c   :  { %v2851_v41 = vld [vmem:[%s7774_s0 + $0xe98] sm:$0xf]  ;;  %2848 = vst [vmem:[%s7775_s1 + $0xe78] sm:$0xf] %v2847_v39  ;;  %2850 = vst [vmem:[%s7775_s1 + $0xe88] sm:$0xf] %v2849_v40 }
 0x15d   :  { %2852 = vst [vmem:[%s7775_s1 + $0xe98] sm:$0xf] %v2851_v41  ;;  %v2853_v42 = vld [vmem:[%s7774_s0 + $0xea8] sm:$0xf]  ;;  %v2855_v43 = vld [vmem:[%s7774_s0 + $0xeb8] sm:$0xf] }
 0x15e   :  { %v2857_v44 = vld [vmem:[%s7774_s0 + $0xec8] sm:$0xf]  ;;  %2854 = vst [vmem:[%s7775_s1 + $0xea8] sm:$0xf] %v2853_v42  ;;  %2856 = vst [vmem:[%s7775_s1 + $0xeb8] sm:$0xf] %v2855_v43 }
 0x15f   :  { %2858 = vst [vmem:[%s7775_s1 + $0xec8] sm:$0xf] %v2857_v44  ;;  %v2859_v45 = vld [vmem:[%s7774_s0 + $0xed8] sm:$0xf]  ;;  %v2861_v46 = vld [vmem:[%s7774_s0 + $0xee8] sm:$0xf] }
 0x160   :  { %v2863_v47 = vld [vmem:[%s7774_s0 + $0xef8] sm:$0xf]  ;;  %2860 = vst [vmem:[%s7775_s1 + $0xed8] sm:$0xf] %v2859_v45  ;;  %2862 = vst [vmem:[%s7775_s1 + $0xee8] sm:$0xf] %v2861_v46 }
 0x161   :  { %2864 = vst [vmem:[%s7775_s1 + $0xef8] sm:$0xf] %v2863_v47  ;;  %v2865_v48 = vld [vmem:[%s7774_s0 + $0xf08] sm:$0xf]  ;;  %v2867_v49 = vld [vmem:[%s7774_s0 + $0xf18] sm:$0xf] }
 0x162   :  { %v2869_v50 = vld [vmem:[%s7774_s0 + $0xf28] sm:$0xf]  ;;  %2866 = vst [vmem:[%s7775_s1 + $0xf08] sm:$0xf] %v2865_v48  ;;  %2868 = vst [vmem:[%s7775_s1 + $0xf18] sm:$0xf] %v2867_v49 }
 0x163   :  { %2870 = vst [vmem:[%s7775_s1 + $0xf28] sm:$0xf] %v2869_v50  ;;  %v2871_v51 = vld [vmem:[%s7774_s0 + $0xf38] sm:$0xf]  ;;  %v2873_v52 = vld [vmem:[%s7774_s0 + $0xf48] sm:$0xf] }
 0x164   :  { %v2875_v53 = vld [vmem:[%s7774_s0 + $0xf58] sm:$0xf]  ;;  %2872 = vst [vmem:[%s7775_s1 + $0xf38] sm:$0xf] %v2871_v51  ;;  %2874 = vst [vmem:[%s7775_s1 + $0xf48] sm:$0xf] %v2873_v52 }
 0x165   :  { %2876 = vst [vmem:[%s7775_s1 + $0xf58] sm:$0xf] %v2875_v53  ;;  %v2877_v54 = vld [vmem:[%s7774_s0 + $0xf68] sm:$0xf]  ;;  %v2879_v55 = vld [vmem:[%s7774_s0 + $0xf78] sm:$0xf] }
 0x166   :  { %v2881_v56 = vld [vmem:[%s7774_s0 + $0xf88] sm:$0xf]  ;;  %2878 = vst [vmem:[%s7775_s1 + $0xf68] sm:$0xf] %v2877_v54  ;;  %2880 = vst [vmem:[%s7775_s1 + $0xf78] sm:$0xf] %v2879_v55 }
 0x167   :  { %2882 = vst [vmem:[%s7775_s1 + $0xf88] sm:$0xf] %v2881_v56  ;;  %v2883_v57 = vld [vmem:[%s7774_s0 + $0xf98] sm:$0xf]  ;;  %v2885_v58 = vld [vmem:[%s7774_s0 + $0xfa8] sm:$0xf] }
 0x168   :  { %v2887_v59 = vld [vmem:[%s7774_s0 + $0xfb8] sm:$0xf]  ;;  %2884 = vst [vmem:[%s7775_s1 + $0xf98] sm:$0xf] %v2883_v57  ;;  %2886 = vst [vmem:[%s7775_s1 + $0xfa8] sm:$0xf] %v2885_v58 }
 0x169   :  { %2888 = vst [vmem:[%s7775_s1 + $0xfb8] sm:$0xf] %v2887_v59  ;;  %v2889_v60 = vld [vmem:[%s7774_s0 + $0xfc8] sm:$0xf]  ;;  %v2891_v61 = vld [vmem:[%s7774_s0 + $0xfd8] sm:$0xf] }
 0x16a   :  { %v2893_v62 = vld [vmem:[%s7774_s0 + $0xfe8] sm:$0xf]  ;;  %2890 = vst [vmem:[%s7775_s1 + $0xfc8] sm:$0xf] %v2889_v60  ;;  %2892 = vst [vmem:[%s7775_s1 + $0xfd8] sm:$0xf] %v2891_v61 }
 0x16b   :  { %2894 = vst [vmem:[%s7775_s1 + $0xfe8] sm:$0xf] %v2893_v62  ;;  %v2895_v63 = vld [vmem:[%s7774_s0 + $0xff8] sm:$0xf]  ;;  %v2897_v0 = vld [vmem:[%s7774_s0 + $0x1008] sm:$0xf] }
 0x16c   :  { %v2899_v1 = vld [vmem:[%s7774_s0 + $0x1018] sm:$0xf]  ;;  %2896 = vst [vmem:[%s7775_s1 + $0xff8] sm:$0xf] %v2895_v63  ;;  %2898 = vst [vmem:[%s7775_s1 + $0x1008] sm:$0xf] %v2897_v0 }
 0x16d   :  { %2900 = vst [vmem:[%s7775_s1 + $0x1018] sm:$0xf] %v2899_v1  ;;  %v2901_v2 = vld [vmem:[%s7774_s0 + $0x1028] sm:$0xf]  ;;  %v2903_v3 = vld [vmem:[%s7774_s0 + $0x1038] sm:$0xf] }
 0x16e   :  { %v2905_v4 = vld [vmem:[%s7774_s0 + $0x1048] sm:$0xf]  ;;  %2902 = vst [vmem:[%s7775_s1 + $0x1028] sm:$0xf] %v2901_v2  ;;  %2904 = vst [vmem:[%s7775_s1 + $0x1038] sm:$0xf] %v2903_v3 }
 0x16f   :  { %2906 = vst [vmem:[%s7775_s1 + $0x1048] sm:$0xf] %v2905_v4  ;;  %v2907_v5 = vld [vmem:[%s7774_s0 + $0x1058] sm:$0xf]  ;;  %v2909_v6 = vld [vmem:[%s7774_s0 + $0x1068] sm:$0xf] }
 0x170   :  { %v2911_v7 = vld [vmem:[%s7774_s0 + $0x1078] sm:$0xf]  ;;  %2908 = vst [vmem:[%s7775_s1 + $0x1058] sm:$0xf] %v2907_v5  ;;  %2910 = vst [vmem:[%s7775_s1 + $0x1068] sm:$0xf] %v2909_v6 }
 0x171   :  { %2912 = vst [vmem:[%s7775_s1 + $0x1078] sm:$0xf] %v2911_v7  ;;  %v2913_v8 = vld [vmem:[%s7774_s0 + $0x1088] sm:$0xf]  ;;  %v2915_v9 = vld [vmem:[%s7774_s0 + $0x1098] sm:$0xf] }
 0x172   :  { %v2917_v10 = vld [vmem:[%s7774_s0 + $0x10a8] sm:$0xf]  ;;  %2914 = vst [vmem:[%s7775_s1 + $0x1088] sm:$0xf] %v2913_v8  ;;  %2916 = vst [vmem:[%s7775_s1 + $0x1098] sm:$0xf] %v2915_v9 }
 0x173   :  { %2918 = vst [vmem:[%s7775_s1 + $0x10a8] sm:$0xf] %v2917_v10  ;;  %v2919_v11 = vld [vmem:[%s7774_s0 + $0x10b8] sm:$0xf]  ;;  %v2921_v12 = vld [vmem:[%s7774_s0 + $0x10c8] sm:$0xf] }
 0x174   :  { %v2923_v13 = vld [vmem:[%s7774_s0 + $0x10d8] sm:$0xf]  ;;  %2920 = vst [vmem:[%s7775_s1 + $0x10b8] sm:$0xf] %v2919_v11  ;;  %2922 = vst [vmem:[%s7775_s1 + $0x10c8] sm:$0xf] %v2921_v12 }
 0x175   :  { %2924 = vst [vmem:[%s7775_s1 + $0x10d8] sm:$0xf] %v2923_v13  ;;  %v2925_v14 = vld [vmem:[%s7774_s0 + $0x10e8] sm:$0xf]  ;;  %v2927_v15 = vld [vmem:[%s7774_s0 + $0x10f8] sm:$0xf] }
 0x176   :  { %v2929_v16 = vld [vmem:[%s7774_s0 + $0x1108] sm:$0xf]  ;;  %2926 = vst [vmem:[%s7775_s1 + $0x10e8] sm:$0xf] %v2925_v14  ;;  %2928 = vst [vmem:[%s7775_s1 + $0x10f8] sm:$0xf] %v2927_v15 }
 0x177   :  { %2930 = vst [vmem:[%s7775_s1 + $0x1108] sm:$0xf] %v2929_v16  ;;  %v2931_v17 = vld [vmem:[%s7774_s0 + $0x1118] sm:$0xf]  ;;  %v2933_v18 = vld [vmem:[%s7774_s0 + $0x1128] sm:$0xf] }
 0x178   :  { %v2935_v19 = vld [vmem:[%s7774_s0 + $0x1138] sm:$0xf]  ;;  %2932 = vst [vmem:[%s7775_s1 + $0x1118] sm:$0xf] %v2931_v17  ;;  %2934 = vst [vmem:[%s7775_s1 + $0x1128] sm:$0xf] %v2933_v18 }
 0x179   :  { %2936 = vst [vmem:[%s7775_s1 + $0x1138] sm:$0xf] %v2935_v19  ;;  %v2937_v20 = vld [vmem:[%s7774_s0 + $0x1148] sm:$0xf]  ;;  %v2939_v21 = vld [vmem:[%s7774_s0 + $0x1158] sm:$0xf] }
 0x17a   :  { %v2941_v22 = vld [vmem:[%s7774_s0 + $0x1168] sm:$0xf]  ;;  %2938 = vst [vmem:[%s7775_s1 + $0x1148] sm:$0xf] %v2937_v20  ;;  %2940 = vst [vmem:[%s7775_s1 + $0x1158] sm:$0xf] %v2939_v21 }
 0x17b   :  { %2942 = vst [vmem:[%s7775_s1 + $0x1168] sm:$0xf] %v2941_v22  ;;  %v2943_v23 = vld [vmem:[%s7774_s0 + $0x1178] sm:$0xf]  ;;  %v2945_v24 = vld [vmem:[%s7774_s0 + $0x1188] sm:$0xf] }
 0x17c   :  { %v2947_v25 = vld [vmem:[%s7774_s0 + $0x1198] sm:$0xf]  ;;  %2944 = vst [vmem:[%s7775_s1 + $0x1178] sm:$0xf] %v2943_v23  ;;  %2946 = vst [vmem:[%s7775_s1 + $0x1188] sm:$0xf] %v2945_v24 }
 0x17d   :  { %2948 = vst [vmem:[%s7775_s1 + $0x1198] sm:$0xf] %v2947_v25  ;;  %v2949_v26 = vld [vmem:[%s7774_s0 + $0x11a8] sm:$0xf]  ;;  %v2951_v27 = vld [vmem:[%s7774_s0 + $0x11b8] sm:$0xf] }
 0x17e   :  { %v2953_v28 = vld [vmem:[%s7774_s0 + $0x11c8] sm:$0xf]  ;;  %2950 = vst [vmem:[%s7775_s1 + $0x11a8] sm:$0xf] %v2949_v26  ;;  %2952 = vst [vmem:[%s7775_s1 + $0x11b8] sm:$0xf] %v2951_v27 }
 0x17f   :  { %2954 = vst [vmem:[%s7775_s1 + $0x11c8] sm:$0xf] %v2953_v28  ;;  %v2955_v29 = vld [vmem:[%s7774_s0 + $0x11d8] sm:$0xf]  ;;  %v2957_v30 = vld [vmem:[%s7774_s0 + $0x11e8] sm:$0xf] }
 0x180   :  { %v2959_v31 = vld [vmem:[%s7774_s0 + $0x11f8] sm:$0xf]  ;;  %2956 = vst [vmem:[%s7775_s1 + $0x11d8] sm:$0xf] %v2955_v29  ;;  %2958 = vst [vmem:[%s7775_s1 + $0x11e8] sm:$0xf] %v2957_v30 }
 0x181   :  { %2960 = vst [vmem:[%s7775_s1 + $0x11f8] sm:$0xf] %v2959_v31  ;;  %v2961_v32 = vld [vmem:[%s7774_s0 + $0x1208] sm:$0xf]  ;;  %v2963_v33 = vld [vmem:[%s7774_s0 + $0x1218] sm:$0xf] }
 0x182   :  { %v2965_v34 = vld [vmem:[%s7774_s0 + $0x1228] sm:$0xf]  ;;  %2962 = vst [vmem:[%s7775_s1 + $0x1208] sm:$0xf] %v2961_v32  ;;  %2964 = vst [vmem:[%s7775_s1 + $0x1218] sm:$0xf] %v2963_v33 }
 0x183   :  { %2966 = vst [vmem:[%s7775_s1 + $0x1228] sm:$0xf] %v2965_v34  ;;  %v2967_v35 = vld [vmem:[%s7774_s0 + $0x1238] sm:$0xf]  ;;  %v2969_v36 = vld [vmem:[%s7774_s0 + $0x1248] sm:$0xf] }
 0x184   :  { %v2971_v37 = vld [vmem:[%s7774_s0 + $0x1258] sm:$0xf]  ;;  %2968 = vst [vmem:[%s7775_s1 + $0x1238] sm:$0xf] %v2967_v35  ;;  %2970 = vst [vmem:[%s7775_s1 + $0x1248] sm:$0xf] %v2969_v36 }
 0x185   :  { %2972 = vst [vmem:[%s7775_s1 + $0x1258] sm:$0xf] %v2971_v37  ;;  %v2973_v38 = vld [vmem:[%s7774_s0 + $0x1268] sm:$0xf]  ;;  %v2975_v39 = vld [vmem:[%s7774_s0 + $0x1278] sm:$0xf] }
 0x186   :  { %v2977_v40 = vld [vmem:[%s7774_s0 + $0x1288] sm:$0xf]  ;;  %2974 = vst [vmem:[%s7775_s1 + $0x1268] sm:$0xf] %v2973_v38  ;;  %2976 = vst [vmem:[%s7775_s1 + $0x1278] sm:$0xf] %v2975_v39 }
 0x187   :  { %2978 = vst [vmem:[%s7775_s1 + $0x1288] sm:$0xf] %v2977_v40  ;;  %v2979_v41 = vld [vmem:[%s7774_s0 + $0x1298] sm:$0xf]  ;;  %v2981_v42 = vld [vmem:[%s7774_s0 + $0x12a8] sm:$0xf] }
 0x188   :  { %v2983_v43 = vld [vmem:[%s7774_s0 + $0x12b8] sm:$0xf]  ;;  %2980 = vst [vmem:[%s7775_s1 + $0x1298] sm:$0xf] %v2979_v41  ;;  %2982 = vst [vmem:[%s7775_s1 + $0x12a8] sm:$0xf] %v2981_v42 }
 0x189   :  { %2984 = vst [vmem:[%s7775_s1 + $0x12b8] sm:$0xf] %v2983_v43  ;;  %v2985_v44 = vld [vmem:[%s7774_s0 + $0x12c8] sm:$0xf]  ;;  %v2987_v45 = vld [vmem:[%s7774_s0 + $0x12d8] sm:$0xf] }
 0x18a   :  { %v2989_v46 = vld [vmem:[%s7774_s0 + $0x12e8] sm:$0xf]  ;;  %2986 = vst [vmem:[%s7775_s1 + $0x12c8] sm:$0xf] %v2985_v44  ;;  %2988 = vst [vmem:[%s7775_s1 + $0x12d8] sm:$0xf] %v2987_v45 }
 0x18b   :  { %2990 = vst [vmem:[%s7775_s1 + $0x12e8] sm:$0xf] %v2989_v46  ;;  %v2991_v47 = vld [vmem:[%s7774_s0 + $0x12f8] sm:$0xf]  ;;  %v2993_v48 = vld [vmem:[%s7774_s0 + $0x1308] sm:$0xf] }
 0x18c   :  { %v2995_v49 = vld [vmem:[%s7774_s0 + $0x1318] sm:$0xf]  ;;  %2992 = vst [vmem:[%s7775_s1 + $0x12f8] sm:$0xf] %v2991_v47  ;;  %2994 = vst [vmem:[%s7775_s1 + $0x1308] sm:$0xf] %v2993_v48 }
 0x18d   :  { %2996 = vst [vmem:[%s7775_s1 + $0x1318] sm:$0xf] %v2995_v49  ;;  %v2997_v50 = vld [vmem:[%s7774_s0 + $0x1328] sm:$0xf]  ;;  %v2999_v51 = vld [vmem:[%s7774_s0 + $0x1338] sm:$0xf] }
 0x18e   :  { %v3001_v52 = vld [vmem:[%s7774_s0 + $0x1348] sm:$0xf]  ;;  %2998 = vst [vmem:[%s7775_s1 + $0x1328] sm:$0xf] %v2997_v50  ;;  %3000 = vst [vmem:[%s7775_s1 + $0x1338] sm:$0xf] %v2999_v51 }
 0x18f   :  { %3002 = vst [vmem:[%s7775_s1 + $0x1348] sm:$0xf] %v3001_v52  ;;  %v3003_v53 = vld [vmem:[%s7774_s0 + $0x1358] sm:$0xf]  ;;  %v3005_v54 = vld [vmem:[%s7774_s0 + $0x1368] sm:$0xf] }
 0x190   :  { %v3007_v55 = vld [vmem:[%s7774_s0 + $0x1378] sm:$0xf]  ;;  %3004 = vst [vmem:[%s7775_s1 + $0x1358] sm:$0xf] %v3003_v53  ;;  %3006 = vst [vmem:[%s7775_s1 + $0x1368] sm:$0xf] %v3005_v54 }
 0x191   :  { %3008 = vst [vmem:[%s7775_s1 + $0x1378] sm:$0xf] %v3007_v55  ;;  %v3009_v56 = vld [vmem:[%s7774_s0 + $0x1388] sm:$0xf]  ;;  %v3011_v57 = vld [vmem:[%s7774_s0 + $0x1398] sm:$0xf] }
 0x192   :  { %v3013_v58 = vld [vmem:[%s7774_s0 + $0x13a8] sm:$0xf]  ;;  %3010 = vst [vmem:[%s7775_s1 + $0x1388] sm:$0xf] %v3009_v56  ;;  %3012 = vst [vmem:[%s7775_s1 + $0x1398] sm:$0xf] %v3011_v57 }
 0x193   :  { %3014 = vst [vmem:[%s7775_s1 + $0x13a8] sm:$0xf] %v3013_v58  ;;  %v3015_v59 = vld [vmem:[%s7774_s0 + $0x13b8] sm:$0xf]  ;;  %v3017_v60 = vld [vmem:[%s7774_s0 + $0x13c8] sm:$0xf] }
 0x194   :  { %v3019_v61 = vld [vmem:[%s7774_s0 + $0x13d8] sm:$0xf]  ;;  %3016 = vst [vmem:[%s7775_s1 + $0x13b8] sm:$0xf] %v3015_v59  ;;  %3018 = vst [vmem:[%s7775_s1 + $0x13c8] sm:$0xf] %v3017_v60 }
 0x195   :  { %3020 = vst [vmem:[%s7775_s1 + $0x13d8] sm:$0xf] %v3019_v61  ;;  %v3021_v62 = vld [vmem:[%s7774_s0 + $0x13e8] sm:$0xf]  ;;  %v3023_v63 = vld [vmem:[%s7774_s0 + $0x13f8] sm:$0xf] }
 0x196   :  { %v3025_v0 = vld [vmem:[%s7774_s0 + $0x1408] sm:$0xf]  ;;  %3022 = vst [vmem:[%s7775_s1 + $0x13e8] sm:$0xf] %v3021_v62  ;;  %3024 = vst [vmem:[%s7775_s1 + $0x13f8] sm:$0xf] %v3023_v63 }
 0x197   :  { %3026 = vst [vmem:[%s7775_s1 + $0x1408] sm:$0xf] %v3025_v0  ;;  %v3027_v1 = vld [vmem:[%s7774_s0 + $0x1418] sm:$0xf]  ;;  %v3029_v2 = vld [vmem:[%s7774_s0 + $0x1428] sm:$0xf] }
 0x198   :  { %v3031_v3 = vld [vmem:[%s7774_s0 + $0x1438] sm:$0xf]  ;;  %3028 = vst [vmem:[%s7775_s1 + $0x1418] sm:$0xf] %v3027_v1  ;;  %3030 = vst [vmem:[%s7775_s1 + $0x1428] sm:$0xf] %v3029_v2 }
 0x199   :  { %3032 = vst [vmem:[%s7775_s1 + $0x1438] sm:$0xf] %v3031_v3  ;;  %v3033_v4 = vld [vmem:[%s7774_s0 + $0x1448] sm:$0xf]  ;;  %v3035_v5 = vld [vmem:[%s7774_s0 + $0x1458] sm:$0xf] }
 0x19a   :  { %v3037_v6 = vld [vmem:[%s7774_s0 + $0x1468] sm:$0xf]  ;;  %3034 = vst [vmem:[%s7775_s1 + $0x1448] sm:$0xf] %v3033_v4  ;;  %3036 = vst [vmem:[%s7775_s1 + $0x1458] sm:$0xf] %v3035_v5 }
 0x19b   :  { %3038 = vst [vmem:[%s7775_s1 + $0x1468] sm:$0xf] %v3037_v6  ;;  %v3039_v7 = vld [vmem:[%s7774_s0 + $0x1478] sm:$0xf]  ;;  %v3041_v8 = vld [vmem:[%s7774_s0 + $0x1488] sm:$0xf] }
 0x19c   :  { %v3043_v9 = vld [vmem:[%s7774_s0 + $0x1498] sm:$0xf]  ;;  %3040 = vst [vmem:[%s7775_s1 + $0x1478] sm:$0xf] %v3039_v7  ;;  %3042 = vst [vmem:[%s7775_s1 + $0x1488] sm:$0xf] %v3041_v8 }
 0x19d   :  { %3044 = vst [vmem:[%s7775_s1 + $0x1498] sm:$0xf] %v3043_v9  ;;  %v3045_v10 = vld [vmem:[%s7774_s0 + $0x14a8] sm:$0xf]  ;;  %v3047_v11 = vld [vmem:[%s7774_s0 + $0x14b8] sm:$0xf] }
 0x19e   :  { %v3049_v12 = vld [vmem:[%s7774_s0 + $0x14c8] sm:$0xf]  ;;  %3046 = vst [vmem:[%s7775_s1 + $0x14a8] sm:$0xf] %v3045_v10  ;;  %3048 = vst [vmem:[%s7775_s1 + $0x14b8] sm:$0xf] %v3047_v11 }
 0x19f   :  { %3050 = vst [vmem:[%s7775_s1 + $0x14c8] sm:$0xf] %v3049_v12  ;;  %v3051_v13 = vld [vmem:[%s7774_s0 + $0x14d8] sm:$0xf]  ;;  %v3053_v14 = vld [vmem:[%s7774_s0 + $0x14e8] sm:$0xf] }
 0x1a0   :  { %v3055_v15 = vld [vmem:[%s7774_s0 + $0x14f8] sm:$0xf]  ;;  %3052 = vst [vmem:[%s7775_s1 + $0x14d8] sm:$0xf] %v3051_v13  ;;  %3054 = vst [vmem:[%s7775_s1 + $0x14e8] sm:$0xf] %v3053_v14 }
 0x1a1   :  { %3056 = vst [vmem:[%s7775_s1 + $0x14f8] sm:$0xf] %v3055_v15  ;;  %v3057_v16 = vld [vmem:[%s7774_s0 + $0x1508] sm:$0xf]  ;;  %v3059_v17 = vld [vmem:[%s7774_s0 + $0x1518] sm:$0xf] }
 0x1a2   :  { %v3061_v18 = vld [vmem:[%s7774_s0 + $0x1528] sm:$0xf]  ;;  %3058 = vst [vmem:[%s7775_s1 + $0x1508] sm:$0xf] %v3057_v16  ;;  %3060 = vst [vmem:[%s7775_s1 + $0x1518] sm:$0xf] %v3059_v17 }
 0x1a3   :  { %3062 = vst [vmem:[%s7775_s1 + $0x1528] sm:$0xf] %v3061_v18  ;;  %v3063_v19 = vld [vmem:[%s7774_s0 + $0x1538] sm:$0xf]  ;;  %v3065_v20 = vld [vmem:[%s7774_s0 + $0x1548] sm:$0xf] }
 0x1a4   :  { %v3067_v21 = vld [vmem:[%s7774_s0 + $0x1558] sm:$0xf]  ;;  %3064 = vst [vmem:[%s7775_s1 + $0x1538] sm:$0xf] %v3063_v19  ;;  %3066 = vst [vmem:[%s7775_s1 + $0x1548] sm:$0xf] %v3065_v20 }
 0x1a5   :  { %3068 = vst [vmem:[%s7775_s1 + $0x1558] sm:$0xf] %v3067_v21  ;;  %v3069_v22 = vld [vmem:[%s7774_s0 + $0x1568] sm:$0xf]  ;;  %v3071_v23 = vld [vmem:[%s7774_s0 + $0x1578] sm:$0xf] }
 0x1a6   :  { %v3073_v24 = vld [vmem:[%s7774_s0 + $0x1588] sm:$0xf]  ;;  %3070 = vst [vmem:[%s7775_s1 + $0x1568] sm:$0xf] %v3069_v22  ;;  %3072 = vst [vmem:[%s7775_s1 + $0x1578] sm:$0xf] %v3071_v23 }
 0x1a7   :  { %3074 = vst [vmem:[%s7775_s1 + $0x1588] sm:$0xf] %v3073_v24  ;;  %v3075_v25 = vld [vmem:[%s7774_s0 + $0x1598] sm:$0xf]  ;;  %v3077_v26 = vld [vmem:[%s7774_s0 + $0x15a8] sm:$0xf] }
 0x1a8   :  { %v3079_v27 = vld [vmem:[%s7774_s0 + $0x15b8] sm:$0xf]  ;;  %3076 = vst [vmem:[%s7775_s1 + $0x1598] sm:$0xf] %v3075_v25  ;;  %3078 = vst [vmem:[%s7775_s1 + $0x15a8] sm:$0xf] %v3077_v26 }
 0x1a9   :  { %3080 = vst [vmem:[%s7775_s1 + $0x15b8] sm:$0xf] %v3079_v27  ;;  %v3081_v28 = vld [vmem:[%s7774_s0 + $0x15c8] sm:$0xf]  ;;  %v3083_v29 = vld [vmem:[%s7774_s0 + $0x15d8] sm:$0xf] }
 0x1aa   :  { %v3085_v30 = vld [vmem:[%s7774_s0 + $0x15e8] sm:$0xf]  ;;  %3082 = vst [vmem:[%s7775_s1 + $0x15c8] sm:$0xf] %v3081_v28  ;;  %3084 = vst [vmem:[%s7775_s1 + $0x15d8] sm:$0xf] %v3083_v29 }
 0x1ab   :  { %3086 = vst [vmem:[%s7775_s1 + $0x15e8] sm:$0xf] %v3085_v30  ;;  %v3087_v31 = vld [vmem:[%s7774_s0 + $0x15f8] sm:$0xf]  ;;  %v3089_v32 = vld [vmem:[%s7774_s0 + $0x1608] sm:$0xf] }
 0x1ac   :  { %v3091_v33 = vld [vmem:[%s7774_s0 + $0x1618] sm:$0xf]  ;;  %3088 = vst [vmem:[%s7775_s1 + $0x15f8] sm:$0xf] %v3087_v31  ;;  %3090 = vst [vmem:[%s7775_s1 + $0x1608] sm:$0xf] %v3089_v32 }
 0x1ad   :  { %3092 = vst [vmem:[%s7775_s1 + $0x1618] sm:$0xf] %v3091_v33  ;;  %v3093_v34 = vld [vmem:[%s7774_s0 + $0x1628] sm:$0xf]  ;;  %v3095_v35 = vld [vmem:[%s7774_s0 + $0x1638] sm:$0xf] }
 0x1ae   :  { %v3097_v36 = vld [vmem:[%s7774_s0 + $0x1648] sm:$0xf]  ;;  %3094 = vst [vmem:[%s7775_s1 + $0x1628] sm:$0xf] %v3093_v34  ;;  %3096 = vst [vmem:[%s7775_s1 + $0x1638] sm:$0xf] %v3095_v35 }
 0x1af   :  { %3098 = vst [vmem:[%s7775_s1 + $0x1648] sm:$0xf] %v3097_v36  ;;  %v3099_v37 = vld [vmem:[%s7774_s0 + $0x1658] sm:$0xf]  ;;  %v3101_v38 = vld [vmem:[%s7774_s0 + $0x1668] sm:$0xf] }
 0x1b0   :  { %v3103_v39 = vld [vmem:[%s7774_s0 + $0x1678] sm:$0xf]  ;;  %3100 = vst [vmem:[%s7775_s1 + $0x1658] sm:$0xf] %v3099_v37  ;;  %3102 = vst [vmem:[%s7775_s1 + $0x1668] sm:$0xf] %v3101_v38 }
 0x1b1   :  { %3104 = vst [vmem:[%s7775_s1 + $0x1678] sm:$0xf] %v3103_v39  ;;  %v3105_v40 = vld [vmem:[%s7774_s0 + $0x1688] sm:$0xf]  ;;  %v3107_v41 = vld [vmem:[%s7774_s0 + $0x1698] sm:$0xf] }
 0x1b2   :  { %v3109_v42 = vld [vmem:[%s7774_s0 + $0x16a8] sm:$0xf]  ;;  %3106 = vst [vmem:[%s7775_s1 + $0x1688] sm:$0xf] %v3105_v40  ;;  %3108 = vst [vmem:[%s7775_s1 + $0x1698] sm:$0xf] %v3107_v41 }
 0x1b3   :  { %3110 = vst [vmem:[%s7775_s1 + $0x16a8] sm:$0xf] %v3109_v42  ;;  %v3111_v43 = vld [vmem:[%s7774_s0 + $0x16b8] sm:$0xf]  ;;  %v3113_v44 = vld [vmem:[%s7774_s0 + $0x16c8] sm:$0xf] }
 0x1b4   :  { %v3115_v45 = vld [vmem:[%s7774_s0 + $0x16d8] sm:$0xf]  ;;  %3112 = vst [vmem:[%s7775_s1 + $0x16b8] sm:$0xf] %v3111_v43  ;;  %3114 = vst [vmem:[%s7775_s1 + $0x16c8] sm:$0xf] %v3113_v44 }
 0x1b5   :  { %3116 = vst [vmem:[%s7775_s1 + $0x16d8] sm:$0xf] %v3115_v45  ;;  %v3117_v46 = vld [vmem:[%s7774_s0 + $0x16e8] sm:$0xf]  ;;  %v3119_v47 = vld [vmem:[%s7774_s0 + $0x16f8] sm:$0xf] }
 0x1b6   :  { %v3121_v48 = vld [vmem:[%s7774_s0 + $0x1708] sm:$0xf]  ;;  %3118 = vst [vmem:[%s7775_s1 + $0x16e8] sm:$0xf] %v3117_v46  ;;  %3120 = vst [vmem:[%s7775_s1 + $0x16f8] sm:$0xf] %v3119_v47 }
 0x1b7   :  { %3122 = vst [vmem:[%s7775_s1 + $0x1708] sm:$0xf] %v3121_v48  ;;  %v3123_v49 = vld [vmem:[%s7774_s0 + $0x1718] sm:$0xf]  ;;  %v3125_v50 = vld [vmem:[%s7774_s0 + $0x1728] sm:$0xf] }
 0x1b8   :  { %v3127_v51 = vld [vmem:[%s7774_s0 + $0x1738] sm:$0xf]  ;;  %3124 = vst [vmem:[%s7775_s1 + $0x1718] sm:$0xf] %v3123_v49  ;;  %3126 = vst [vmem:[%s7775_s1 + $0x1728] sm:$0xf] %v3125_v50 }
 0x1b9   :  { %3128 = vst [vmem:[%s7775_s1 + $0x1738] sm:$0xf] %v3127_v51  ;;  %v3129_v52 = vld [vmem:[%s7774_s0 + $0x1748] sm:$0xf]  ;;  %v3131_v53 = vld [vmem:[%s7774_s0 + $0x1758] sm:$0xf] }
 0x1ba   :  { %v3133_v54 = vld [vmem:[%s7774_s0 + $0x1768] sm:$0xf]  ;;  %3130 = vst [vmem:[%s7775_s1 + $0x1748] sm:$0xf] %v3129_v52  ;;  %3132 = vst [vmem:[%s7775_s1 + $0x1758] sm:$0xf] %v3131_v53 }
 0x1bb   :  { %3134 = vst [vmem:[%s7775_s1 + $0x1768] sm:$0xf] %v3133_v54  ;;  %v3135_v55 = vld [vmem:[%s7774_s0 + $0x1778] sm:$0xf]  ;;  %v3137_v56 = vld [vmem:[%s7774_s0 + $0x1788] sm:$0xf] }
 0x1bc   :  { %v3139_v57 = vld [vmem:[%s7774_s0 + $0x1798] sm:$0xf]  ;;  %3136 = vst [vmem:[%s7775_s1 + $0x1778] sm:$0xf] %v3135_v55  ;;  %3138 = vst [vmem:[%s7775_s1 + $0x1788] sm:$0xf] %v3137_v56 }
 0x1bd   :  { %3140 = vst [vmem:[%s7775_s1 + $0x1798] sm:$0xf] %v3139_v57  ;;  %v3141_v58 = vld [vmem:[%s7774_s0 + $0x17a8] sm:$0xf]  ;;  %v3143_v59 = vld [vmem:[%s7774_s0 + $0x17b8] sm:$0xf] }
 0x1be   :  { %v3145_v60 = vld [vmem:[%s7774_s0 + $0x17c8] sm:$0xf]  ;;  %3142 = vst [vmem:[%s7775_s1 + $0x17a8] sm:$0xf] %v3141_v58  ;;  %3144 = vst [vmem:[%s7775_s1 + $0x17b8] sm:$0xf] %v3143_v59 }
 0x1bf   :  { %3146 = vst [vmem:[%s7775_s1 + $0x17c8] sm:$0xf] %v3145_v60  ;;  %v3147_v61 = vld [vmem:[%s7774_s0 + $0x17d8] sm:$0xf]  ;;  %v3149_v62 = vld [vmem:[%s7774_s0 + $0x17e8] sm:$0xf] }
 0x1c0   :  { %v3151_v63 = vld [vmem:[%s7774_s0 + $0x17f8] sm:$0xf]  ;;  %3148 = vst [vmem:[%s7775_s1 + $0x17d8] sm:$0xf] %v3147_v61  ;;  %3150 = vst [vmem:[%s7775_s1 + $0x17e8] sm:$0xf] %v3149_v62 }
 0x1c1   :  { %3152 = vst [vmem:[%s7775_s1 + $0x17f8] sm:$0xf] %v3151_v63 }
 0x1c2   :  { %2359 = vsyncadd [#allocation2], 73728 }
 0x1c3   :  { %3154 = dma.done.wait [#allocation2], 73728 }
 0x1c4   :  { %3155 = vsyncadd [#allocation2], 4294893568 }
 0x1c5   :  { %2365 = vsyncmov [#allocation2] }
 0x1c8   :  { %s2366_s4 = vpop.sfrf %2365 }
 0x1c9   :  { %p3153_p0 = scmp.ne.s32.totalorder %s2366_s4, 0 }
 0x1cb   :  { %2370 = shalt.err (%p3153_p0)  }

</bundles_post_ra>
